<compile_context>
chip_gen: v6e
topology: v6e:2x2x1
jax: 0.10.0
libtpu: 0.0.40
codegen_flags: <defaults>
</compile_context>

<pallas_src>
import numpy as np
import jax
import jax.numpy as jnp
from jax import lax
from jax.experimental import pallas as pl
from jax.experimental.pallas import tpu as pltpu


def _round_up(a: int, b: int) -> int:
    return (a + b - 1) // b * b


def _time_embedding_kernel(x_ref, wb_ref, o_ref):
    # x_ref : (K, TILE_R)  -- rows 0..pack-1: packed time values, row pack: ones
    #                         (bias carrier), remaining rows: zeros (alignment).
    # wb_ref: (K, LANE)    -- wb[k, k*d_out+j] = w[j] for k < pack,
    #                         wb[pack, k*d_out+j] = b[j], zeros elsewhere.
    # o_ref : (TILE_R, LANE)
    #
    # One MXU contraction does lane expansion + scale + bias; the VPU only runs
    # the sin polynomial; the EUP/XLU stay free.
    z = lax.dot_general(
        x_ref[...], wb_ref[...],
        dimension_numbers=(((0,), (0,)), ((), ())),   # contract lhs dim 0 / rhs dim 0
        precision=lax.Precision.HIGHEST,              # keep f32 accuracy on the MXU
        preferred_element_type=jnp.float32,
    )
    o_ref[...] = jnp.sin(z).astype(o_ref.dtype)


def time_embedding(x, weight, bias, *, out_dtype=jnp.float32, tile_cap_rows=8192):
    """sin(Linear(1, d_out)(x)).  x: (..., 1); weight: (d_out, 1); bias: (d_out,)."""
    assert x.shape[-1] == 1, "Time_embedding expects a trailing feature dim of 1"
    d_out = int(weight.shape[0])
    lead_shape = x.shape[:-1]
    n = int(np.prod(lead_shape)) if lead_shape else 1

    # Lane packing: put `pack` logical output rows side by side in one 128-lane
    # physical row so sin + stores run lane-dense.
    if d_out < 128:
        pack = 128 // d_out
        lane = 128
    else:
        pack = 1
        lane = d_out
    lane_used = pack * d_out
    k_dim = _round_up(pack + 1, 8)          # contraction dim (values + ones + zero pad)

    # --- row tiling -------------------------------------------------------
    rows = pl.cdiv(n, pack)                 # packed rows actually needed
    rows_al = _round_up(rows, 128)          # tile_r must be a multiple of 128
    n128 = rows_al // 128
    # >= 4 grid steps when possible (pipelining + v7x megacore); each output
    # buffer capped at tile_cap_rows rows (4 MiB f32 at lane=128); tiles as even
    # as possible to minimise padding.
    num_tiles = max(pl.cdiv(n128, max(tile_cap_rows // 128, 1)), min(4, n128))
    tile_r = pl.cdiv(n128, num_tiles) * 128
    num_tiles = pl.cdiv(rows_al, tile_r)
    rows_pad = num_tiles * tile_r

    # --- wrapper-side layout plumbing (x is only N scalars: cheap) ---------
    x_flat = x.reshape(n).astype(jnp.float32)
    total = rows_pad * pack
    if total > n:
        x_flat = jnp.pad(x_flat, (0, total - n))
    # logical row r = pack*i + k lives at x_cols[k, i]
    x_cols = x_flat.reshape(rows_pad, pack).T                       # (pack, rows_pad)
    parts = [x_cols, jnp.ones((1, rows_pad), jnp.float32)]
    if k_dim > pack + 1:
        parts.append(jnp.zeros((k_dim - pack - 1, rows_pad), jnp.float32))
    xk = jnp.concatenate(parts, axis=0)                             # (k_dim, rows_pad)

    w_flat = weight.reshape(d_out).astype(jnp.float32)
    b_flat = bias.reshape(d_out).astype(jnp.float32)
    # wb[k, k*d_out + j] = w[j]; wb[pack, k*d_out + j] = b[j]; zeros elsewhere.
    w_rows = (jnp.eye(pack, dtype=jnp.float32)[:, :, None]
              * w_flat[None, None, :]).reshape(pack, lane_used)
    b_row = jnp.tile(b_flat, pack).reshape(1, lane_used)
    wb_parts = [w_rows, b_row]
    if k_dim > pack + 1:
        wb_parts.append(jnp.zeros((k_dim - pack - 1, lane_used), jnp.float32))
    wb = jnp.concatenate(wb_parts, axis=0)                          # (k_dim, lane_used)
    if lane_used < lane:
        wb = jnp.pad(wb, ((0, 0), (0, lane - lane_used)))

    out_itemsize = int(np.dtype(out_dtype).itemsize)
    cost = pl.CostEstimate(
        flops=2 * rows_pad * lane * k_dim,
        transcendentals=rows_pad * lane,
        bytes_accessed=4 * (k_dim * rows_pad + k_dim * lane)
        + rows_pad * lane * out_itemsize,
    )

    out_packed = pl.pallas_call(
        _time_embedding_kernel,
        out_shape=jax.ShapeDtypeStruct((rows_pad, lane), out_dtype),
        grid=(num_tiles,),
        in_specs=[
            pl.BlockSpec((k_dim, tile_r), lambda i: (0, i)),   # x columns, pipelined
            pl.BlockSpec((k_dim, lane), lambda i: (0, 0)),     # weights+bias stay resident
        ],
        out_specs=pl.BlockSpec((tile_r, lane), lambda i: (i, 0)),
        compiler_params=pltpu.CompilerParams(
            dimension_semantics=("parallel",),                 # megacore sharding on v7x
        ),
        cost_estimate=cost,
    )(xk, wb)

    # Unpack: row-major (rows_pad, pack*d_out) == row-major (rows_pad*pack, d_out).
    if lane_used < lane:
        out_packed = out_packed[:, :lane_used]
    out = out_packed.reshape(rows_pad * pack, d_out)
    if rows_pad * pack != n:
        out = out[:n]
    return out.reshape(*lead_shape, d_out)


def make_params(d_out):
    """Deterministic parameter init matching the PyTorch module's __init__."""
    w = (1.0 / 10.0 ** np.linspace(0.0, 9.0, d_out)).astype(np.float32).reshape(d_out, 1)
    b = np.zeros((d_out,), dtype=np.float32)
    return jnp.asarray(w), jnp.asarray(b)


if __name__ == "__main__":
    d_out = 32
    batch, seq = 2, 8

    weight, bias = make_params(d_out)
    w_flat = weight.reshape(d_out)
    b_flat = bias.reshape(d_out)

    key = jax.random.PRNGKey(0)

    # Small demo shape consistent with the module: (batch, seq, 1) time values.
    x = jax.random.uniform(key, (batch, seq, 1), dtype=jnp.float32)
    out = jax.block_until_ready(time_embedding(x, weight, bias))

    # Pure-JAX elementwise reference.
    ref = jnp.sin(x * w_flat + b_flat)          # (batch, seq, d_out)
    np.testing.assert_allclose(np.asarray(out), np.asarray(ref), rtol=1e-5, atol=1e-6)
    assert out.shape == (batch, seq, d_out)

    # Second check exercising the multi-tile grid + ragged padding/slicing path.
    x_big = jax.random.uniform(jax.random.PRNGKey(1), (2, 4100, 1), dtype=jnp.float32)
    out_big = jax.block_until_ready(time_embedding(x_big, weight, bias))
    ref_big = jnp.sin(x_big * w_flat + b_flat)
    np.testing.assert_allclose(np.asarray(out_big), np.asarray(ref_big), rtol=1e-5, atol=1e-6)
    assert out_big.shape == (2, 4100, d_out)

    print("KERNEL_OK")
</pallas_src>

<mosaic_0001>
module attributes {stable_mosaic.version = 11 : i64} {
  func.func @_time_embedding_kernel(%arg0: i32, %arg1: memref<8x128xf32, #tpu.memory_space<vmem>>, %arg2: memref<8x128xf32, #tpu.memory_space<vmem>>, %arg3: memref<128x128xf32, #tpu.memory_space<vmem>>) attributes {dimension_semantics = [#tpu.dimension_semantics<parallel>], iteration_bounds = array<i64: 1>, scalar_prefetch = 0 : i64, scratch_operands = 0 : i64, tpu.core_type = #tpu.core_type<tc>, window_params = [{transform_indices = @transform_0, window_bounds = array<i64: 8, 128>}, {pipeline_mode = #tpu.pipeline_mode<synchronous>, transform_indices = @transform_1, window_bounds = array<i64: 8, 128>}, {transform_indices = @transform_2, window_bounds = array<i64: 128, 128>}]} {
    %c0 = arith.constant 0 : index
    %c0_0 = arith.constant 0 : index
    %0 = vector.load %arg1[%c0, %c0_0] : memref<8x128xf32, #tpu.memory_space<vmem>>, vector<8x128xf32>
    %c0_1 = arith.constant 0 : index
    %c0_2 = arith.constant 0 : index
    %1 = vector.load %arg2[%c0_1, %c0_2] : memref<8x128xf32, #tpu.memory_space<vmem>>, vector<8x128xf32>
    %cst = arith.constant dense<0.000000e+00> : vector<128x128xf32>
    %2 = tpu.matmul %0, %1, %cst {dimension_numbers = #tpu.dot_dimension_numbers<[0], [0], [1], [1], [0, 1, 1, 1], [], []>, precision = #tpu.contract_precision<fp32>} : vector<8x128xf32>, vector<8x128xf32>, vector<128x128xf32> -> vector<128x128xf32>
    %3 = math.sin %2 : vector<128x128xf32>
    %c0_3 = arith.constant 0 : index
    %c0_4 = arith.constant 0 : index
    %4 = vector.load %arg3[%c0_3, %c0_4] : memref<128x128xf32, #tpu.memory_space<vmem>>, vector<128x128xf32>
    tpu.vector_store %arg3[%c0_3, %c0_4], %3 {strides = array<i32>} : memref<128x128xf32, #tpu.memory_space<vmem>>, vector<128x128xf32>,
    return
  }
  func.func @transform_0(%arg0: i32) -> (i32, i32) {
    %c0_i32 = arith.constant 0 : i32
    %c0_i32_0 = arith.constant 0 : i32
    return %c0_i32, %arg0 : i32, i32
  }
  func.func @transform_1(%arg0: i32) -> (i32, i32) {
    %c0_i32 = arith.constant 0 : i32
    %c0_i32_0 = arith.constant 0 : i32
    %c0_i32_1 = arith.constant 0 : i32
    return %c0_i32, %c0_i32_0 : i32, i32
  }
  func.func @transform_2(%arg0: i32) -> (i32, i32) {
    %c0_i32 = arith.constant 0 : i32
    %c0_i32_0 = arith.constant 0 : i32
    return %arg0, %c0_i32 : i32, i32
  }
}

</mosaic_0001>

<bundles_post_ra>
// kernel: tpu_custom_call.1
= control target key start
LH: loop header
LB: loop body
LE: loop exit
PB: predicated region body
PF: predicated region fallthrough
CT: control target
= control target key end

     0   :  { %7 = vsyncpa [#allocation3], 0  ;;  %s4967_s0 = inlined_call_operand.hbm [shape: f32[8,128], index: 0, kind: input, shape index: {}]   ;;  %s4968_s1 = inlined_call_operand.hbm [shape: f32[8,128], index: 1, kind: input, shape index: {}]   ;;  %s4969_s2 = inlined_call_operand.hbm [shape: f32[128,128], index: 2, kind: output, shape index: {}]  }
   0x1   :  { %8 = vsyncpa [#allocation6], 0 }
   0x2   :  { %9 = vsyncpa [#allocation4], 0  ;;  %s3436_s9 = smov [#allocation2]   ;;  %s3437_s11 = smov [#allocation5]  }
   0x3   :  { %s16_s10 = sshll.u32 %s3436_s9, 4  ;;  %s26_s12 = sshll.u32 %s3437_s11, 4  ;;  %s17_s10 = int_to_ptr.vmem [resolvable:$true] %s16_s10  ;;  %s27_s12 = int_to_ptr.vmem [resolvable:$true] %s26_s12 }
   0x4   :  { %s3378_s13 = scalar_lea.vmem %s17_s10, 128  ;;  %p3383_p1 = scmp.lt.s32.totalorder %s17_s10, %s17_s10 }
   0x5   :  { %p3379_p0 = scmp.ne.s32.totalorder %s17_s10, %s3378_s13  ;;  %p3384_p2 = scmp.lt.s32.totalorder %s3378_s13, %s3378_s13 }
   0x7   :  { %p3385_p3 = por %p3384_p2, %p3383_p1 }
   0x9   :  { %p3386_p4 = pnand %p3385_p3, %p3379_p0 }
   0xb   :  { %3389 = shalt.err (!%p3386_p4)
}
   0xc   :  { %19 = dma.hbm_to_vmem [thread:$0]  %s4967_s0, 128, %s17_s10, [#allocation3]  }
   0xd   :  { %s3398_s16 = scalar_lea.vmem %s27_s12, 128  ;;  %p3403_p6 = scmp.lt.s32.totalorder %s27_s12, %s27_s12 }
   0xe   :  { %p3399_p5 = scmp.ne.s32.totalorder %s27_s12, %s3398_s16  ;;  %p3404_p7 = scmp.lt.s32.totalorder %s3398_s16, %s3398_s16 }
  0x10   :  { %p3405_p8 = por %p3404_p7, %p3403_p6 }
  0x12   :  { %p3406_p9 = pnand %p3405_p8, %p3399_p5 }
  0x14   :  { %3409 = shalt.err (!%p3406_p9)
}
  0x15   :  { %29 = dma.hbm_to_vmem [thread:$0]  %s4968_s1, 128, %s27_s12, [#allocation6]  }
  0x16   :  { %3430 = dma.done.wait [#allocation3], 128  }
  0x17   :  { %3431 = vsyncadd [#allocation3], 4294967168 }
  0x18   :  { %3432 = dma.done.wait [#allocation6], 128  }
  0x19   :  { %3433 = vsyncadd [#allocation6], 4294967168  ;;  %v36_v0 = vld [vmem:[#allocation2] sm:$0xff]  ;;  %v37_v1 = vld [vmem:[#allocation5] sm:$0xff]  ;;  %vm70_vm0 = vcmask 64512   ;;  %s3444_s0 = smov [#allocation7]  }
  0x1a   :  { %38 = vxpose.xlu0.b32.start.end [1/1] (short) %v36_v0, 128  ;;  %v3468_v2 = vand.u32 4294901760, %v37_v1  ;;  %s2895_s1 = sshll.u32 %s3444_s0, 4  ;;  %s2896_s1 = int_to_ptr.vmem [resolvable:$true] %s2895_s1 }
  0x1b   :  { %s3410_s19 = scalar_lea.vmem %s2896_s1, 2048  ;;  %p3415_p11 = scmp.lt.s32.totalorder %s2896_s1, %s2896_s1 }
  0x1c   :  { %v377_v3 = vsub.f32 %v37_v1, %v3468_v2  ;;  %3074 = vmatprep.subr.mxu0 %v3468_v2  ;;  %p3411_p10 = scmp.ne.s32.totalorder %s2896_s1, %s3410_s19  ;;  %p3416_p12 = scmp.lt.s32.totalorder %s3410_s19, %s3410_s19 }
  0x1d   :  { %3075 = vmatpush3.msra.mxu0 %v3468_v2 }
  0x1e   :  { %v3473_v4 = vand.u32 4294901760, %v377_v3  ;;  %3126 = vmatprep.subr.mxu0 %v377_v3  ;;  %p3417_p13 = por %p3416_p12, %p3415_p11 }
  0x20   :  { %v379_v5 = vsub.f32 %v377_v3, %v3473_v4  ;;  %p3418_p0 = pnand %p3417_p13, %p3411_p10 }
  0x22   :  { %v380_v6 = vand.u32 4294901760, %v379_v5 }
  0x24   :  { %3100 = vmatprep.subr.mxu1 %v380_v6 }
  0x25   :  { %3101 = vmatpush3.msra.mxu1 %v380_v6 }
  0x26   :  { %3152 = vmatprep.subr.mxu1 %v3468_v2 }
  0x96   :  { %v54_v7 = vpop.trf.xlu0 }
  0x97   :  { %v72_v8 = vsel %vm70_vm0, %v54_v7, 0 }
  0x98   :  { %v3478_v9 = vand.u32 4294901760, %v72_v8 }
  0x9a   :  { %v3481_v10 = vsub.f32 %v72_v8, %v3478_v9  ;;  %3102 = vmatprep.mubr.f32.mxu1 %v3478_v9  ;;  %v55_v11 = vpop.trf.xlu0 }
  0x9b   :  { %v75_v12 = vsel %vm70_vm0, %v55_v11, 0 }
  0x9c   :  { %v3485_v13 = vand.u32 4294901760, %v75_v12  ;;  %v187_v14 = vand.u32 4294901760, %v3481_v10 }
  0x9e   :  { %v3489_v15 = vsub.f32 %v75_v12, %v3485_v13  ;;  %3103 = vmatmul.mubr.f32.vlgmr.msra.gmra.mxu1 %v3485_v13  ;;  %v56_v16 = vpop.trf.xlu0  ;;  %v188_v17 = vsub.f32 %v3481_v10, %v187_v14 }
  0x9f   :  { %v78_v18 = vsel %vm70_vm0, %v56_v16, 0  ;;  %3153 = vmatpush3.msra.mxu1 %v3468_v2 }
  0xa0   :  { %v197_v19 = vand.u32 4294901760, %v3489_v15  ;;  %v3498_v20 = vand.u32 4294901760, %v78_v18  ;;  %v189_v21 = vand.u32 4294901760, %v188_v17  ;;  %3204 = vmatprep.subr.mxu1 %v3468_v2 }
  0xa2   :  { %v3502_v22 = vsub.f32 %v78_v18, %v3498_v20  ;;  %3076 = vmatprep.mubr.f32.mxu0 %v189_v21  ;;  %3105 = vmatprep.mubr.f32.mxu1 %v3498_v20  ;;  %v57_v23 = vpop.trf.xlu0  ;;  %v198_v24 = vsub.f32 %v3489_v15, %v197_v19 }
  0xa3   :  { %v81_v25 = vsel %vm70_vm0, %v57_v23, 0 }
  0xa4   :  { %v207_v26 = vand.u32 4294901760, %v3502_v22  ;;  %v3510_v27 = vand.u32 4294901760, %v81_v25  ;;  %v199_v28 = vand.u32 4294901760, %v198_v24 }
  0xa6   :  { %v3513_v29 = vsub.f32 %v81_v25, %v3510_v27  ;;  %3077 = vmatmul.mubr.f32.vlgmr.msra.gmra.mxu0 %v199_v28  ;;  %3106 = vmatmul.mubr.f32.gmra.mxu1 %v3510_v27  ;;  %v58_v30 = vpop.trf.xlu0  ;;  %v208_v31 = vsub.f32 %v3502_v22, %v207_v26 }
  0xa7   :  { %v84_v32 = vsel %vm70_vm0, %v58_v30, 0  ;;  %3127 = vmatpush3.msra.mxu0 %v377_v3 }
  0xa8   :  { %v217_v33 = vand.u32 4294901760, %v3513_v29  ;;  %v3521_v34 = vand.u32 4294901760, %v84_v32  ;;  %v209_v35 = vand.u32 4294901760, %v208_v31  ;;  %3178 = vmatprep.subr.mxu0 %v3473_v4 }
  0xaa   :  { %v3525_v36 = vsub.f32 %v84_v32, %v3521_v34  ;;  %3079 = vmatprep.mubr.f32.mxu0 %v209_v35  ;;  %3108 = vmatprep.mubr.f32.mxu1 %v3521_v34  ;;  %v59_v37 = vpop.trf.xlu0  ;;  %v218_v38 = vsub.f32 %v3513_v29, %v217_v33 }
  0xab   :  { %v87_v39 = vsel %vm70_vm0, %v59_v37, 0 }
  0xac   :  { %v227_v40 = vand.u32 4294901760, %v3525_v36  ;;  %v3533_v41 = vand.u32 4294901760, %v87_v39  ;;  %v219_v42 = vand.u32 4294901760, %v218_v38 }
  0xae   :  { %v3536_v43 = vsub.f32 %v87_v39, %v3533_v41  ;;  %3080 = vmatmul.mubr.f32.gmra.mxu0 %v219_v42  ;;  %3109 = vmatmul.mubr.f32.gmra.mxu1 %v3533_v41  ;;  %v60_v44 = vpop.trf.xlu0  ;;  %v228_v45 = vsub.f32 %v3525_v36, %v227_v40 }
  0xaf   :  { %v90_v46 = vsel %vm70_vm0, %v60_v44, 0 }
  0xb0   :  { %v237_v47 = vand.u32 4294901760, %v3536_v43  ;;  %v3544_v48 = vand.u32 4294901760, %v90_v46  ;;  %v229_v49 = vand.u32 4294901760, %v228_v45 }
  0xb2   :  { %v3547_v50 = vsub.f32 %v90_v46, %v3544_v48  ;;  %3082 = vmatprep.mubr.f32.mxu0 %v229_v49  ;;  %3111 = vmatprep.mubr.f32.mxu1 %v3544_v48  ;;  %v61_v51 = vpop.trf.xlu0  ;;  %v238_v52 = vsub.f32 %v3536_v43, %v237_v47 }
  0xb3   :  { %v93_v53 = vsel %vm70_vm0, %v61_v51, 0 }
  0xb4   :  { %v247_v54 = vand.u32 4294901760, %v3547_v50  ;;  %v3555_v55 = vand.u32 4294901760, %v93_v53  ;;  %v239_v56 = vand.u32 4294901760, %v238_v52 }
  0xb6   :  { %v3558_v57 = vsub.f32 %v93_v53, %v3555_v55  ;;  %3083 = vmatmul.mubr.f32.gmra.mxu0 %v239_v56  ;;  %3112 = vmatmul.mubr.f32.gmra.mxu1 %v3555_v55  ;;  %v62_v58 = vpop.trf.xlu0  ;;  %v248_v59 = vsub.f32 %v3547_v50, %v247_v54 }
  0xb7   :  { %v96_v60 = vsel %vm70_vm0, %v62_v58, 0 }
  0xb8   :  { %v257_v61 = vand.u32 4294901760, %v3558_v57  ;;  %v3566_v62 = vand.u32 4294901760, %v96_v60  ;;  %v249_v63 = vand.u32 4294901760, %v248_v59 }
  0xba   :  { %v3569_v0 = vsub.f32 %v96_v60, %v3566_v62  ;;  %3085 = vmatprep.mubr.f32.mxu0 %v249_v63  ;;  %3114 = vmatprep.mubr.f32.mxu1 %v3566_v62  ;;  %v63_v1 = vpop.trf.xlu0  ;;  %v258_v3 = vsub.f32 %v3558_v57, %v257_v61 }
  0xbb   :  { %v99_v5 = vsel %vm70_vm0, %v63_v1, 0 }
  0xbc   :  { %v267_v6 = vand.u32 4294901760, %v3569_v0  ;;  %v3577_v7 = vand.u32 4294901760, %v99_v5  ;;  %v259_v8 = vand.u32 4294901760, %v258_v3 }
  0xbe   :  { %v3580_v11 = vsub.f32 %v99_v5, %v3577_v7  ;;  %3086 = vmatmul.mubr.f32.gmra.mxu0 %v259_v8  ;;  %3115 = vmatmul.mubr.f32.gmra.mxu1 %v3577_v7  ;;  %v64_v12 = vpop.trf.xlu0  ;;  %v268_v16 = vsub.f32 %v3569_v0, %v267_v6 }
  0xbf   :  { %v102_v17 = vsel %vm70_vm0, %v64_v12, 0 }
  0xc0   :  { %v277_v18 = vand.u32 4294901760, %v3580_v11  ;;  %v3588_v21 = vand.u32 4294901760, %v102_v17  ;;  %v269_v23 = vand.u32 4294901760, %v268_v16 }
  0xc2   :  { %v3591_v24 = vsub.f32 %v102_v17, %v3588_v21  ;;  %3088 = vmatprep.mubr.f32.mxu0 %v269_v23  ;;  %3117 = vmatprep.mubr.f32.mxu1 %v3588_v21  ;;  %v65_v25 = vpop.trf.xlu0  ;;  %v278_v28 = vsub.f32 %v3580_v11, %v277_v18 }
  0xc3   :  { %v105_v30 = vsel %vm70_vm0, %v65_v25, 0 }
  0xc4   :  { %v287_v31 = vand.u32 4294901760, %v3591_v24  ;;  %v3599_v32 = vand.u32 4294901760, %v105_v30  ;;  %v279_v35 = vand.u32 4294901760, %v278_v28 }
  0xc6   :  { %v3602_v37 = vsub.f32 %v105_v30, %v3599_v32  ;;  %3089 = vmatmul.mubr.f32.gmra.mxu0 %v279_v35  ;;  %3118 = vmatmul.mubr.f32.gmra.mxu1 %v3599_v32  ;;  %v66_v38 = vpop.trf.xlu0  ;;  %v288_v39 = vsub.f32 %v3591_v24, %v287_v31 }
  0xc7   :  { %v108_v42 = vsel %vm70_vm0, %v66_v38, 0 }
  0xc8   :  { %v297_v44 = vand.u32 4294901760, %v3602_v37  ;;  %v3610_v45 = vand.u32 4294901760, %v108_v42  ;;  %v289_v46 = vand.u32 4294901760, %v288_v39 }
  0xca   :  { %v3613_v49 = vsub.f32 %v108_v42, %v3610_v45  ;;  %3091 = vmatprep.mubr.f32.mxu0 %v289_v46  ;;  %3120 = vmatprep.mubr.f32.mxu1 %v3610_v45  ;;  %v67_v51 = vpop.trf.xlu0  ;;  %v298_v52 = vsub.f32 %v3602_v37, %v297_v44 }
  0xcb   :  { %v111_v53 = vsel %vm70_vm0, %v67_v51, 0 }
  0xcc   :  { %v307_v56 = vand.u32 4294901760, %v3613_v49  ;;  %v3619_v58 = vand.u32 4294901760, %v111_v53  ;;  %v299_v59 = vand.u32 4294901760, %v298_v52 }
  0xce   :  { %v316_v60 = vsub.f32 %v111_v53, %v3619_v58  ;;  %3092 = vmatmul.mubr.f32.gmra.mxu0 %v299_v59  ;;  %3121 = vmatmul.mubr.f32.gmra.mxu1 %v3619_v58  ;;  %v68_v63 = vpop.trf.xlu0  ;;  %v308_v1 = vsub.f32 %v3613_v49, %v307_v56 }
  0xcf   :  { %v114_v3 = vsel %vm70_vm0, %v68_v63, 0 }
  0xd0   :  { %v317_v5 = vand.u32 4294901760, %v316_v60  ;;  %v3625_v8 = vand.u32 4294901760, %v114_v3  ;;  %v309_v12 = vand.u32 4294901760, %v308_v1 }
  0xd2   :  { %v326_v16 = vsub.f32 %v114_v3, %v3625_v8  ;;  %3094 = vmatprep.mubr.f32.mxu0 %v309_v12  ;;  %3123 = vmatprep.mubr.f32.mxu1 %v3625_v8  ;;  %v69_v17 = vpop.trf.xlu0  ;;  %v318_v23 = vsub.f32 %v316_v60, %v317_v5 }
  0xd3   :  { %v117_v25 = vsel %vm70_vm0, %v69_v17, 0 }
  0xd4   :  { %v327_v28 = vand.u32 4294901760, %v326_v16  ;;  %v3630_v30 = vand.u32 4294901760, %v117_v25  ;;  %v319_v35 = vand.u32 4294901760, %v318_v23 }
  0xd6   :  { %v336_v38 = vsub.f32 %v117_v25, %v3630_v30  ;;  %3095 = vmatmul.mubr.f32.gmra.mxu0 %v319_v35  ;;  %3124 = vmatmul.mubr.f32.gmra.mxu1 %v3630_v30  ;;  %v328_v39 = vsub.f32 %v326_v16, %v327_v28 }
  0xd7   :  { %3154 = vmatprep.mubr.f32.mxu1 %v187_v14 }
  0xd8   :  { %v337_v42 = vand.u32 4294901760, %v336_v38  ;;  %v329_v46 = vand.u32 4294901760, %v328_v39 }
  0xda   :  { %3097 = vmatprep.mubr.f32.mxu0 %v329_v46  ;;  %3155 = vmatmul.mubr.f32.vlgmr.msra.gmra.mxu1 %v197_v19  ;;  %v338_v51 = vsub.f32 %v336_v38, %v337_v42 }
  0xdb   :  { %3157 = vmatprep.mubr.f32.mxu1 %v207_v26  ;;  %3205 = vmatpush3.msra.mxu1 %v3468_v2 }
  0xdc   :  { %v339_v52 = vand.u32 4294901760, %v338_v51 }
  0xde   :  { %3098 = vmatmul.mubr.f32.gmra.mxu0 %v339_v52  ;;  %3158 = vmatmul.mubr.f32.gmra.mxu1 %v217_v33 }
  0xdf   :  { %3128 = vmatprep.mubr.f32.mxu0 %v3481_v10  ;;  %3160 = vmatprep.mubr.f32.mxu1 %v227_v40 }
  0xe2   :  { %3129 = vmatmul.mubr.f32.vlgmr.msra.gmra.mxu0 %v3489_v15  ;;  %3161 = vmatmul.mubr.f32.gmra.mxu1 %v237_v47 }
  0xe3   :  { %3179 = vmatpush3.msra.mxu0 %v3473_v4  ;;  %3131 = vmatprep.mubr.f32.mxu0 %v3502_v22 }
  0xe4   :  { %3163 = vmatprep.mubr.f32.mxu1 %v247_v54 }
  0xe6   :  { %3132 = vmatmul.mubr.f32.gmra.mxu0 %v3513_v29  ;;  %3164 = vmatmul.mubr.f32.gmra.mxu1 %v257_v61 }
  0xe7   :  { %3134 = vmatprep.mubr.f32.mxu0 %v3525_v36  ;;  %3166 = vmatprep.mubr.f32.mxu1 %v267_v6 }
  0xea   :  { %3135 = vmatmul.mubr.f32.gmra.mxu0 %v3536_v43  ;;  %3167 = vmatmul.mubr.f32.gmra.mxu1 %v277_v18 }
  0xeb   :  { %3137 = vmatprep.mubr.f32.mxu0 %v3547_v50  ;;  %3169 = vmatprep.mubr.f32.mxu1 %v287_v31 }
  0xee   :  { %3138 = vmatmul.mubr.f32.gmra.mxu0 %v3558_v57  ;;  %3170 = vmatmul.mubr.f32.gmra.mxu1 %v297_v44 }
  0xef   :  { %3140 = vmatprep.mubr.f32.mxu0 %v3569_v0  ;;  %3172 = vmatprep.mubr.f32.mxu1 %v307_v56 }
  0xf2   :  { %3141 = vmatmul.mubr.f32.gmra.mxu0 %v3580_v11  ;;  %3173 = vmatmul.mubr.f32.gmra.mxu1 %v317_v5 }
  0xf3   :  { %3143 = vmatprep.mubr.f32.mxu0 %v3591_v24  ;;  %3175 = vmatprep.mubr.f32.mxu1 %v327_v28 }
  0xf6   :  { %3144 = vmatmul.mubr.f32.gmra.mxu0 %v3602_v37  ;;  %3176 = vmatmul.mubr.f32.gmra.mxu1 %v337_v42 }
  0xf7   :  { %3146 = vmatprep.mubr.f32.mxu0 %v3613_v49  ;;  %3206 = vmatprep.mubr.f32.mxu1 %v3478_v9 }
  0xfa   :  { %3147 = vmatmul.mubr.f32.gmra.mxu0 %v316_v60  ;;  %3207 = vmatmul.mubr.f32.vlgmr.msra.gmra.mxu1 %v3485_v13 }
  0xfb   :  { %3149 = vmatprep.mubr.f32.mxu0 %v326_v16  ;;  %3209 = vmatprep.mubr.f32.mxu1 %v3498_v20 }
  0xfe   :  { %3150 = vmatmul.mubr.f32.gmra.mxu0 %v336_v38  ;;  %3210 = vmatmul.mubr.f32.gmra.mxu1 %v3510_v27 }
  0xff   :  { %3180 = vmatprep.mubr.f32.mxu0 %v3478_v9  ;;  %3212 = vmatprep.mubr.f32.mxu1 %v3521_v34 }
 0x102   :  { %3181 = vmatmul.mubr.f32.vlgmr.msra.gmra.mxu0 %v3485_v13  ;;  %3213 = vmatmul.mubr.f32.gmra.mxu1 %v3533_v41 }
 0x103   :  { %3183 = vmatprep.mubr.f32.mxu0 %v3498_v20  ;;  %3215 = vmatprep.mubr.f32.mxu1 %v3544_v48 }
 0x106   :  { %3184 = vmatmul.mubr.f32.gmra.mxu0 %v3510_v27  ;;  %3216 = vmatmul.mubr.f32.gmra.mxu1 %v3555_v55 }
 0x107   :  { %3186 = vmatprep.mubr.f32.mxu0 %v3521_v34  ;;  %3218 = vmatprep.mubr.f32.mxu1 %v3566_v62 }
 0x10a   :  { %3187 = vmatmul.mubr.f32.gmra.mxu0 %v3533_v41  ;;  %3219 = vmatmul.mubr.f32.gmra.mxu1 %v3577_v7 }
 0x10b   :  { %3189 = vmatprep.mubr.f32.mxu0 %v3544_v48  ;;  %3221 = vmatprep.mubr.f32.mxu1 %v3588_v21 }
 0x10e   :  { %3190 = vmatmul.mubr.f32.gmra.mxu0 %v3555_v55  ;;  %3222 = vmatmul.mubr.f32.gmra.mxu1 %v3599_v32 }
 0x10f   :  { %3192 = vmatprep.mubr.f32.mxu0 %v3566_v62  ;;  %3224 = vmatprep.mubr.f32.mxu1 %v3610_v45 }
 0x112   :  { %3193 = vmatmul.mubr.f32.gmra.mxu0 %v3577_v7  ;;  %3225 = vmatmul.mubr.f32.gmra.mxu1 %v3619_v58 }
 0x113   :  { %3195 = vmatprep.mubr.f32.mxu0 %v3588_v21  ;;  %3227 = vmatprep.mubr.f32.mxu1 %v3625_v8 }
 0x116   :  { %3196 = vmatmul.mubr.f32.gmra.mxu0 %v3599_v32  ;;  %3228 = vmatmul.mubr.f32.gmra.mxu1 %v3630_v30 }
 0x117   :  { %3198 = vmatprep.mubr.f32.mxu0 %v3610_v45 }
 0x11a   :  { %3199 = vmatmul.mubr.f32.gmra.mxu0 %v3619_v58 }
 0x11b   :  { %3201 = vmatprep.mubr.f32.mxu0 %v3625_v8 }
 0x11e   :  { %3202 = vmatmul.mubr.f32.gmra.mxu0 %v3630_v30 }
 0x15e   :  { %v3703_v2 = vpop.f32.mrf.mxu1 }
 0x160   :  { %v417_v9 = vpop.f32.mrf.mxu1 }
 0x166   :  { %v3705_v4 = vpop.f32.mrf.mxu0  ;;  %v3107_v14 = vpop.f32.mrf.mxu1 }
 0x168   :  { %v191_v10 = vpop.f32.mrf.mxu0  ;;  %v429_v20 = vpop.f32.mrf.mxu1 }
 0x169   :  { %v3707_v13 = vadd.f32 %v417_v9, %v191_v10 }
 0x16e   :  { %v3081_v15 = vpop.f32.mrf.mxu0  ;;  %v3110_v27 = vpop.f32.mrf.mxu1 }
 0x16f   :  { %v3709_v19 = vadd.f32 %v3107_v14, %v3081_v15 }
 0x170   :  { %v211_v22 = vpop.f32.mrf.mxu0  ;;  %v441_v34 = vpop.f32.mrf.mxu1 }
 0x171   :  { %v430_v26 = vadd.f32 %v429_v20, %v211_v22 }
 0x176   :  { %v3084_v29 = vpop.f32.mrf.mxu0  ;;  %v3113_v41 = vpop.f32.mrf.mxu1 }
 0x177   :  { %v448_v33 = vadd.f32 %v3110_v27, %v3084_v29 }
 0x178   :  { %v231_v36 = vpop.f32.mrf.mxu0  ;;  %v453_v48 = vpop.f32.mrf.mxu1 }
 0x179   :  { %v442_v40 = vadd.f32 %v441_v34, %v231_v36 }
 0x17e   :  { %v3087_v43 = vpop.f32.mrf.mxu0  ;;  %v3116_v55 = vpop.f32.mrf.mxu1 }
 0x17f   :  { %v460_v47 = vadd.f32 %v3113_v41, %v3087_v43 }
 0x180   :  { %v251_v50 = vpop.f32.mrf.mxu0  ;;  %v465_v62 = vpop.f32.mrf.mxu1 }
 0x181   :  { %v454_v54 = vadd.f32 %v453_v48, %v251_v50 }
 0x186   :  { %v3090_v57 = vpop.f32.mrf.mxu0  ;;  %v3119_v7 = vpop.f32.mrf.mxu1 }
 0x187   :  { %v472_v61 = vadd.f32 %v3116_v55, %v3090_v57 }
 0x188   :  { %v271_v0 = vpop.f32.mrf.mxu0  ;;  %v477_v11 = vpop.f32.mrf.mxu1 }
 0x189   :  { %v466_v6 = vadd.f32 %v465_v62, %v271_v0 }
 0x18e   :  { %v3093_v18 = vpop.f32.mrf.mxu0  ;;  %v3122_v24 = vpop.f32.mrf.mxu1 }
 0x18f   :  { %v484_v21 = vadd.f32 %v3119_v7, %v3093_v18 }
 0x190   :  { %v291_v31 = vpop.f32.mrf.mxu0  ;;  %v489_v37 = vpop.f32.mrf.mxu1 }
 0x191   :  { %v478_v32 = vadd.f32 %v477_v11, %v291_v31 }
 0x196   :  { %v3096_v44 = vpop.f32.mrf.mxu0  ;;  %v3125_v45 = vpop.f32.mrf.mxu1 }
 0x197   :  { %v496_v49 = vadd.f32 %v3122_v24, %v3096_v44 }
 0x198   :  { %v311_v53 = vpop.f32.mrf.mxu0  ;;  %v501_v56 = vpop.f32.mrf.mxu1 }
 0x199   :  { %v490_v58 = vadd.f32 %v489_v37, %v311_v53 }
 0x19a   :  { %v3156_v59 = vpop.f32.mrf.mxu1 }
 0x19c   :  { %v760_v60 = vpop.f32.mrf.mxu1 }
 0x19e   :  { %v3099_v63 = vpop.f32.mrf.mxu0  ;;  %v3711_v1 = vpop.f32.mrf.mxu1 }
 0x19f   :  { %v508_v3 = vadd.f32 %v3125_v45, %v3099_v63 }
 0x1a0   :  { %v331_v5 = vpop.f32.mrf.mxu0  ;;  %v776_v8 = vpop.f32.mrf.mxu1 }
 0x1a1   :  { %v502_v12 = vadd.f32 %v501_v56, %v331_v5 }
 0x1a2   :  { %v3130_v16 = vpop.f32.mrf.mxu0  ;;  %v3162_v17 = vpop.f32.mrf.mxu1 }
 0x1a4   :  { %v581_v23 = vpop.f32.mrf.mxu0  ;;  %v792_v25 = vpop.f32.mrf.mxu1 }
 0x1a6   :  { %v3133_v28 = vpop.f32.mrf.mxu0  ;;  %v3165_v30 = vpop.f32.mrf.mxu1 }
 0x1a7   :  { %v603_v63 = vadd.f32 %v3133_v28, %v3709_v19 }
 0x1a8   :  { %v595_v35 = vpop.f32.mrf.mxu0  ;;  %v808_v38 = vpop.f32.mrf.mxu1 }
 0x1a9   :  { %v596_v39 = vadd.f32 %v595_v35, %v430_v26 }
 0x1aa   :  { %v3136_v42 = vpop.f32.mrf.mxu0  ;;  %v3713_v46 = vpop.f32.mrf.mxu1 }
 0x1ab   :  { %v617_v51 = vadd.f32 %v3136_v42, %v448_v33  ;;  %v3715_v52 = vadd.f32 %v776_v8, %v596_v39 }
 0x1ac   :  { %v609_v9 = vpop.f32.mrf.mxu0  ;;  %v3717_v10 = vpop.f32.mrf.mxu1 }
 0x1ad   :  { %v610_v14 = vadd.f32 %v609_v9, %v442_v40  ;;  %v3719_v15 = vadd.f32 %v3162_v17, %v617_v51 }
 0x1ae   :  { %v3139_v20 = vpop.f32.mrf.mxu0  ;;  %v3721_v22 = vpop.f32.mrf.mxu1 }
 0x1af   :  { %v631_v27 = vadd.f32 %v3139_v20, %v460_v47  ;;  %v3723_v29 = vadd.f32 %v792_v25, %v610_v14  ;;  %v785_v25 = vadd.f32 %v3711_v1, %v603_v63 }
 0x1b0   :  { %v623_v34 = vpop.f32.mrf.mxu0  ;;  %v3725_v26 = vpop.f32.mrf.mxu1 }
 0x1b1   :  { %v624_v36 = vadd.f32 %v623_v34, %v454_v54  ;;  %v3727_v41 = vadd.f32 %v3165_v30, %v631_v27 }
 0x1b2   :  { %v3142_v33 = vpop.f32.mrf.mxu0  ;;  %v3729_v43 = vpop.f32.mrf.mxu1 }
 0x1b3   :  { %v3731_v48 = vadd.f32 %v3142_v33, %v472_v61  ;;  %v3733_v40 = vadd.f32 %v808_v38, %v624_v36  ;;  %v424_v61 = vadd.f32 %v3703_v2, %v3705_v4 }
 0x1b4   :  { %v637_v50 = vpop.f32.mrf.mxu0  ;;  %v3737_v57 = vpop.f32.mrf.mxu1 }
 0x1b5   :  { %v3735_v55 = vadd.f32 %v637_v50, %v466_v6  ;;  %v589_v31 = vadd.f32 %v3130_v16, %v424_v61 }
 0x1b6   :  { %v3145_v47 = vpop.f32.mrf.mxu0  ;;  %v3743_v54 = vpop.f32.mrf.mxu1 }
 0x1b7   :  { %v3739_v62 = vadd.f32 %v3145_v47, %v484_v21  ;;  %v582_v21 = vadd.f32 %v581_v23, %v3707_v13  ;;  %v769_v56 = vadd.f32 %v3156_v59, %v589_v31 }
 0x1b8   :  { %v651_v0 = vpop.f32.mrf.mxu0  ;;  %v3751_v37 = vpop.f32.mrf.mxu1 }
 0x1b9   :  { %v3741_v7 = vadd.f32 %v651_v0, %v478_v32  ;;  %v761_v5 = vadd.f32 %v760_v60, %v582_v21 }
 0x1ba   :  { %v3148_v11 = vpop.f32.mrf.mxu0  ;;  %v3208_v2 = vpop.f32.mrf.mxu1 }
 0x1bb   :  { %v3747_v18 = vadd.f32 %v3148_v11, %v496_v49 }
 0x1bc   :  { %v665_v24 = vpop.f32.mrf.mxu0  ;;  %v1116_v17 = vpop.f32.mrf.mxu1 }
 0x1bd   :  { %v3749_v6 = vadd.f32 %v665_v24, %v490_v58 }
 0x1be   :  { %v3151_v44 = vpop.f32.mrf.mxu0  ;;  %v3211_v28 = vpop.f32.mrf.mxu1 }
 0x1bf   :  { %v3754_v45 = vadd.f32 %v3151_v44, %v508_v3 }
 0x1c0   :  { %v679_v32 = vpop.f32.mrf.mxu0  ;;  %v1128_v47 = vpop.f32.mrf.mxu1 }
 0x1c1   :  { %v3756_v53 = vadd.f32 %v679_v32, %v502_v12 }
 0x1c2   :  { %v3182_v4 = vpop.f32.mrf.mxu0 }
 0x1c3   :  { %v961_v49 = vadd.f32 %v3182_v4, %v769_v56  ;;  %v3439_v56 = vmov 2475754826  }
 0x1c4   :  { %v954_v8 = vpop.f32.mrf.mxu0 }
 0x1c5   :  { %v3759_v58 = vadd.f32 %v3208_v2, %v961_v49  ;;  %v955_v16 = vadd.f32 %v954_v8, %v761_v5  ;;  %v4971_v2 = vmov 2131351028   ;;  %v4975_v49 = vmov 2102212464  }
 0x1c6   :  { %v3185_v13 = vpop.f32.mrf.mxu0  ;;  %v3442_v8 = vmov 920167782  }
 0x1c7   :  { %v1314_v3 = vand.u32 2147483647, %v3759_v58  ;;  %v1317_v12 = vand.u32 2139095040, %v3759_v58  ;;  %v3764_v23 = vadd.f32 %v1116_v17, %v955_v16  ;;  %v973_v59 = vadd.f32 %v3185_v13, %v785_v25 }
 0x1c8   :  { %v966_v38 = vpop.f32.mrf.mxu0  ;;  %vm1316_vm14 = vcmp.lt.s32.totalorder %v3759_v58, 0 }
 0x1c9   :  { %v1318_v19 = vshrl.u32 %v1317_v12, 23  ;;  %v1321_v60 = vand.u32 8388607, %v1314_v3  ;;  %v1210_v30 = vand.u32 2147483647, %v3764_v23  ;;  %v1213_v35 = vand.u32 2139095040, %v3764_v23 }
 0x1ca   :  { %v3770_v1 = vadd.f32 %v3211_v28, %v973_v59  ;;  %v967_v14 = vadd.f32 %v966_v38, %v3715_v52  ;;  %v3438_v52 = vmov 683565275   ;;  %vm3874_vm15 = vcmp.le.f32.partialorder %v1314_v3, 0.7853982 }
 0x1cb   :  { %v2912_v39 = vadd.s32 4294967169, %v1318_v19  ;;  %v1214_v42 = vshrl.u32 %v1213_v35, 23  ;;  %v1217_v51 = vand.u32 8388607, %v1210_v30  ;;  %v1322_v20 = vor.u32 8388608, %v1321_v60 }
 0x1cc   :  { %v1525_v36 = vand.u32 2139095040, %v3770_v1  ;;  %v3780_v44 = vadd.f32 %v1128_v47, %v967_v14  ;;  %v4973_v19 = vmov 1326507024  }
 0x1cd   :  { %v1324_v9 = vadd.s32 1, %v2912_v39  ;;  %v2908_v27 = vadd.s32 4294967169, %v1214_v42  ;;  %v1218_v34 = vor.u32 8388608, %v1217_v51  ;;  %v3776_v61 = vshll.u32 %v1322_v20, 8 }
 0x1ce   :  { %v1526_v31 = vshrl.u32 %v1525_v36, 23 }
 0x1cf   :  { %vm1325_vm1 = vcmp.gt.s32.totalorder %v1324_v9, 0  ;;  %v1220_v50 = vadd.s32 1, %v2908_v27  ;;  %v3778_v24 = vshll.u32 %v1218_v34, 8 }
 0x1d0   :  { %v1326_v33 = vsel %vm1325_vm1, %v1324_v9, 0 }
 0x1d1   :  { %v1327_v0 = vshrl.u32 %v1326_v33, 5  ;;  %v1328_v11 = vand.u32 31, %v1326_v33  ;;  %vm1221_vm2 = vcmp.gt.s32.totalorder %v1220_v50, 0 }
 0x1d2   :  { %v1222_v39 = vsel %vm1221_vm2, %v1220_v50, 0 }
 0x1d3   :  { %v1329_v21 = vsub.s32 32, %v1328_v11  ;;  %v1331_v32 = vshll.u32 %v3438_v52, %v1328_v11  ;;  %v1334_v63 = vshll.u32 %v3439_v56, %v1328_v11  ;;  %v1337_v4 = vshll.u32 %v4971_v2, %v1328_v11 }
 0x1d4   :  { %v1340_v5 = vshll.u32 %v4975_v49, %v1328_v11  ;;  %v1343_v16 = vshll.u32 %v3442_v8, %v1328_v11  ;;  %vm1346_vm3 = vcmp.lt.s32.totalorder %v1327_v0, 1  ;;  %vm1347_vm4 = vcmp.lt.s32.totalorder %v1327_v0, 2 }
 0x1d5   :  { %v1332_v17 = vshrl.u32 %v3439_v56, %v1329_v21  ;;  %v1335_v25 = vshrl.u32 %v4971_v2, %v1329_v21  ;;  %v1338_v13 = vshrl.u32 %v4975_v49, %v1329_v21  ;;  %v1330_v12 = vshrl.u32 %v3438_v52, %v1329_v21 }
 0x1d6   :  { %v1341_v59 = vshrl.u32 %v3442_v8, %v1329_v21  ;;  %v1344_v28 = vshrl.u32 %v4973_v19, %v1329_v21  ;;  %vm1348_vm5 = vcmp.lt.s32.totalorder %v1327_v0, 3  ;;  %vm1349_vm6 = vcmp.lt.s32.totalorder %v1327_v0, 4 }
 0x1d7   :  { %v1333_v60 = vor.u32 %v1332_v17, %v1331_v32  ;;  %v1336_v35 = vor.u32 %v1335_v25, %v1334_v63  ;;  %v1339_v38 = vor.u32 %v1338_v13, %v1337_v4  ;;  %v1224_v9 = vand.u32 31, %v1222_v39 }
 0x1d8   :  { %v1342_v42 = vor.u32 %v1341_v59, %v1340_v5  ;;  %v1345_v51 = vor.u32 %v1344_v28, %v1343_v16  ;;  %v2920_v63 = vadd.s32 4294967169, %v1526_v31  ;;  %v1223_v16 = vshrl.u32 %v1222_v39, 5 }
 0x1d9   :  { %v1350_v14 = vsel %vm1346_vm3, %v1330_v12, %v1333_v60  ;;  %v1351_v20 = vsel %vm1349_vm6, %v1339_v38, 2102212464  ;;  %v1354_v27 = vsel %vm1346_vm3, %v1333_v60, %v1336_v35  ;;  %v1358_v34 = vsel %vm1346_vm3, %v1336_v35, %v1339_v38 }
 0x1da   :  { %v1352_v36 = vsel %vm1348_vm5, %v1336_v35, %v1351_v20  ;;  %v1355_v33 = vsel %vm1349_vm6, %v1342_v42, 920167782  ;;  %v1359_v47 = vsel %vm1349_vm6, %v1345_v51, 1326507024  ;;  %v1225_v11 = vsub.s32 32, %v1224_v9 }
 0x1db   :  { %v1353_v21 = vsel %vm1347_vm4, %v1350_v14, %v1352_v36  ;;  %v1356_v50 = vsel %vm1348_vm5, %v1339_v38, %v1355_v33  ;;  %v1360_v32 = vsel %vm1348_vm5, %v1342_v42, %v1359_v47  ;;  %v1227_v17 = vshll.u32 %v3438_v52, %v1224_v9 }
 0x1dc   :  { %v1357_v4 = vsel %vm1347_vm4, %v1354_v27, %v1356_v50  ;;  %v1361_v5 = vsel %vm1347_vm4, %v1358_v34, %v1360_v32  ;;  %v1369_v28 = vmul.u32 %v3776_v61, %v1353_v21  ;;  %v1228_v31 = vshrl.u32 %v3439_v56, %v1225_v11 }
 0x1dd   :  { %v3805_v25 = vmul.u32.u64.low %v3776_v61, %v1361_v5  ;;  %v3806_v13 = vmul.u32.u64.high %v3776_v61, %v1361_v5, %v3805_v25  ;;  %v3809_v12 = vmul.u32.u64.low %v3776_v61, %v1357_v4  ;;  %v3810_v59 = vmul.u32.u64.high %v3776_v61, %v1357_v4, %v3809_v12 }
 0x1de   :  { %v1230_v60 = vshll.u32 %v3439_v56, %v1224_v9  ;;  %v1231_v0 = vshrl.u32 %v4971_v2, %v1225_v11  ;;  %v1233_v35 = vshll.u32 %v4971_v2, %v1224_v9  ;;  %v1234_v38 = vshrl.u32 %v4975_v49, %v1225_v11 }
 0x1df   :  { %v1236_v39 = vshll.u32 %v4975_v49, %v1224_v9  ;;  %v1237_v42 = vshrl.u32 %v3442_v8, %v1225_v11  ;;  %v1229_v51 = vor.u32 %v1228_v31, %v1227_v17  ;;  %v1239_v20 = vshll.u32 %v3442_v8, %v1224_v9 }
 0x1e0   :  { %v1232_v14 = vor.u32 %v1231_v0, %v1230_v60  ;;  %v1240_v61 = vshrl.u32 %v4973_v19, %v1225_v11  ;;  %vm1371_vm7 = vc.u32 %v3806_v13, %v3809_v12  ;;  %v1372_v27 = vadd.s32 1, %v3810_v59 }
 0x1e1   :  { %v1226_v34 = vshrl.u32 %v3438_v52, %v1225_v11  ;;  %v1235_v36 = vor.u32 %v1234_v38, %v1233_v35  ;;  %v1238_v33 = vor.u32 %v1237_v42, %v1236_v39  ;;  %vm1242_vm8 = vcmp.lt.s32.totalorder %v1223_v16, 1 }
 0x1e2   :  { %v1241_v47 = vor.u32 %v1240_v61, %v1239_v20  ;;  %vm1243_vm9 = vcmp.lt.s32.totalorder %v1223_v16, 2  ;;  %v1373_v21 = vsel %vm1371_vm7, %v1372_v27, %v3810_v59  ;;  %vm1244_vm10 = vcmp.lt.s32.totalorder %v1223_v16, 3 }
 0x1e3   :  { %vm1245_vm11 = vcmp.lt.s32.totalorder %v1223_v16, 4  ;;  %v1250_v50 = vsel %vm1242_vm8, %v1229_v51, %v1232_v14  ;;  %v1374_v9 = vadd.s32 %v1373_v21, %v1369_v28  ;;  %v1254_v5 = vsel %vm1242_vm8, %v1232_v14, %v1235_v36  ;;  %v3188_v16 = vpop.f32.mrf.mxu0 }
 0x1e4   :  { %v1247_v32 = vsel %vm1245_vm11, %v1235_v36, 2102212464  ;;  %v1251_v4 = vsel %vm1245_vm11, %v1238_v33, 920167782  ;;  %v1246_v17 = vsel %vm1242_vm8, %v1226_v34, %v1229_v51  ;;  %v1255_v31 = vsel %vm1245_vm11, %v1241_v47, 1326507024 }
 0x1e5   :  { %v1252_v25 = vsel %vm1244_vm10, %v1235_v36, %v1251_v4  ;;  %v1532_v60 = vadd.s32 1, %v2920_v63  ;;  %v1375_v0 = vadd.s32 536870912, %v1374_v9  ;;  %v1248_v11 = vsel %vm1244_vm10, %v1232_v14, %v1247_v32 }
 0x1e6   :  { %v1253_v35 = vsel %vm1243_vm9, %v1250_v50, %v1252_v25  ;;  %v1256_v38 = vsel %vm1244_vm10, %v1238_v33, %v1255_v31  ;;  %v4970_v28 = vand.u32 2147483647, %v3770_v1  ;;  %v1249_v63 = vsel %vm1243_vm9, %v1246_v17, %v1248_v11 }
 0x1e7   :  { %v1257_v39 = vsel %vm1243_vm9, %v1254_v5, %v1256_v38  ;;  %v3831_v59 = vmul.u32.u64.low %v3778_v24, %v1253_v35  ;;  %v3832_v42 = vmul.u32.u64.high %v3778_v24, %v1253_v35, %v3831_v59  ;;  %v1376_v20 = vshrl.u32 %v1375_v0, 30 }
 0x1e8   :  { %v3837_v51 = vmul.u32.u64.low %v3778_v24, %v1257_v39  ;;  %v3838_v61 = vmul.u32.u64.high %v3778_v24, %v1257_v39, %v3837_v51  ;;  %vm1533_vm12 = vcmp.gt.s32.totalorder %v1532_v60, 0  ;;  %v3844_v33 = vand.u32 8388607, %v4970_v28 }
 0x1e9   :  { %v1534_v14 = vsel %vm1533_vm12, %v1532_v60, 0  ;;  %v1377_v27 = vshll.u32 %v1376_v20, 30  ;;  %v1268_v36 = vadd.s32 1, %v3832_v42  ;;  %v1421_v47 = vand.u32 2139095040, %v3780_v44 }
 0x1ea   :  { %v1536_v34 = vand.u32 31, %v1534_v14  ;;  %v1265_v50 = vmul.u32 %v3778_v24, %v1249_v63  ;;  %vm1267_vm13 = vc.u32 %v3838_v61, %v3831_v59  ;;  %v1530_v25 = vor.u32 8388608, %v3844_v33 }
 0x1eb   :  { %v3847_v21 = vsub.s32 %v1374_v9, %v1377_v27  ;;  %v1269_v32 = vsel %vm1267_vm13, %v1268_v36, %v3832_v42  ;;  %v1418_v31 = vand.u32 2147483647, %v3780_v44  ;;  %v1422_v9 = vshrl.u32 %v1421_v47, 23 }
 0x1ec   :  { %v1537_v4 = vsub.s32 32, %v1536_v34  ;;  %v1270_v17 = vadd.s32 %v1269_v32, %v1265_v50  ;;  %v3858_v60 = vadd.f32 %v3188_v16, %v3719_v15  ;;  %v1370_v38 = vadd.s32 %v3809_v12, %v3806_v13 }
 0x1ed   :  { %v1380_v5 = vsub.s32 0, %v3847_v21  ;;  %v1535_v39 = vshrl.u32 %v1534_v14, 5  ;;  %v1545_v51 = vshll.u32 %v4971_v2, %v1536_v34  ;;  %v1400_v27 = vsub.s32 4, %v1376_v20 }
 0x1ee   :  { %v1271_v0 = vadd.s32 536870912, %v1270_v17  ;;  %v1540_v11 = vshrl.u32 %v3439_v56, %v1537_v4  ;;  %v1546_v35 = vshrl.u32 %v4975_v49, %v1537_v4  ;;  %v1543_v42 = vshrl.u32 %v4971_v2, %v1537_v4 }
 0x1ef   :  { %v2913_v24 = vmin.u32 %v1380_v5, %v3847_v21  ;;  %v1539_v15 = vshll.u32 %v3438_v52, %v1536_v34  ;;  %v1549_v36 = vshrl.u32 %v3442_v8, %v1537_v4  ;;  %v1542_v50 = vshll.u32 %v3439_v56, %v1536_v34 }
 0x1f0   :  { %v3869_v47 = vshrl.u32 %v1271_v0, 30  ;;  %v1547_v16 = vor.u32 %v1546_v35, %v1545_v51  ;;  %v2916_v32 = vadd.s32 4294967169, %v1422_v9  ;;  %v1548_v5 = vshll.u32 %v4975_v49, %v1536_v34 }
 0x1f1   :  { %v1382_v63 = vclz %v2913_v24  ;;  %v1541_v14 = vor.u32 %v1540_v11, %v1539_v15  ;;  %v1552_v24 = vshrl.u32 %v4973_v19, %v1537_v4  ;;  %v1544_v0 = vor.u32 %v1543_v42, %v1542_v50 }
 0x1f2   :  { %v1273_v28 = vshll.u32 %v3869_v47, 30  ;;  %v1551_v2 = vshll.u32 %v3442_v8, %v1536_v34  ;;  %vm1557_vm0 = vcmp.lt.s32.totalorder %v1535_v39, 4  ;;  %v1401_v9 = vsel %vm1316_vm14, %v1400_v27, %v1376_v20 }
 0x1f3   :  { %v2914_v12 = vadd.s32 4294967294, %v1382_v63  ;;  %v1550_v3 = vor.u32 %v1549_v36, %v1548_v5  ;;  %v1559_v35 = vsel %vm1557_vm0, %v1547_v16, 2102212464  ;;  %v1538_v11 = vshrl.u32 %v3438_v52, %v1537_v4 }
 0x1f4   :  { %v3885_v63 = vsub.s32 %v1270_v17, %v1273_v28  ;;  %v1553_v15 = vor.u32 %v1552_v24, %v1551_v2  ;;  %vm1554_vm2 = vcmp.lt.s32.totalorder %v1535_v39, 1  ;;  %vm1556_vm3 = vcmp.lt.s32.totalorder %v1535_v39, 3 }
 0x1f5   :  { %vm2915_vm1 = vcmp.lt.s32.totalorder %v2914_v12, 0  ;;  %v1558_v50 = vsel %vm1554_vm2, %v1538_v11, %v1541_v14  ;;  %v1560_v20 = vsel %vm1556_vm3, %v1544_v0, %v1559_v35  ;;  %vm1212_vm4 = vcmp.lt.s32.totalorder %v3764_v23, 0 }
 0x1f6   :  { %v1385_v51 = vsel %vm2915_vm1, 0, %v2914_v12  ;;  %v1276_v42 = vsub.s32 0, %v3885_v63  ;;  %v1562_v28 = vsel %vm1554_vm2, %v1541_v14, %v1544_v0  ;;  %v1563_v17 = vsel %vm1557_vm0, %v1550_v3, 920167782 }
 0x1f7   :  { %v1386_v19 = vsub.s32 32, %v1385_v51  ;;  %v1390_v49 = vsub.s32 4294967266, %v1385_v51  ;;  %v1387_v34 = vshll.u32 %v3847_v21, %v1385_v51  ;;  %v1564_v4 = vsel %vm1556_vm3, %v1547_v16, %v1563_v17 }
 0x1f8   :  { %v2909_v2 = vmin.u32 %v1276_v42, %v3885_v63  ;;  %v1566_v12 = vsel %vm1554_vm2, %v1544_v0, %v1547_v16  ;;  %v1567_v5 = vsel %vm1557_vm0, %v1553_v15, 1326507024  ;;  %vm1555_vm5 = vcmp.lt.s32.totalorder %v1535_v39, 2 }
 0x1f9   :  { %v1388_v27 = vshrl.u32 %v1370_v38, %v1386_v19  ;;  %v1391_v36 = vadd.s32 127, %v1390_v49  ;;  %v1568_v51 = vsel %vm1556_vm3, %v1550_v3, %v1567_v5  ;;  %v1403_v49 = vsel %vm3874_vm15, 0, %v1401_v9 }
 0x1fa   :  { %vm3901_vm6 = vcmp.le.f32.partialorder %v1210_v30, 0.7853982  ;;  %v1278_v38 = vclz %v2909_v2  ;;  %v1565_v14 = vsel %vm1555_vm5, %v1562_v28, %v1564_v4  ;;  %v1570_v16 = vshll.u32 %v1530_v25, 8  ;;  %v3214_v30 = vpop.f32.mrf.mxu1 }
 0x1fb   :  { %v1389_v21 = vor.u32 %v1388_v27, %v1387_v34  ;;  %v1392_v24 = vshll.u32 %v1391_v36, 23  ;;  %v1296_v35 = vsub.s32 4, %v3869_v47  ;;  %v1561_v11 = vsel %vm1555_vm5, %v1558_v50, %v1560_v20 }
 0x1fc   :  { %v1569_v39 = vsel %vm1555_vm5, %v1566_v12, %v1568_v51  ;;  %v2910_v15 = vadd.s32 4294967294, %v1278_v38  ;;  %v3911_v27 = vmul.u32.u64.low %v1570_v16, %v1565_v14  ;;  %v3912_v36 = vmul.u32.u64.high %v1570_v16, %v1565_v14, %v3911_v27 }
 0x1fd   :  { %v1393_v0 = vor.u32 4788187, %v1392_v24  ;;  %v1396_v3 = vcvt.s32.f32 %v1389_v21  ;;  %v3908_v34 = vmul.u32.u64.low %v1570_v16, %v1569_v39  ;;  %v3909_v9 = vmul.u32.u64.high %v1570_v16, %v1569_v39, %v3908_v34 }
 0x1fe   :  { %v1428_v28 = vadd.s32 1, %v2916_v32  ;;  %v1266_v33 = vadd.s32 %v3831_v59, %v3838_v61  ;;  %vm2911_vm7 = vcmp.lt.s32.totalorder %v2910_v15, 0  ;;  %v1425_v25 = vand.u32 8388607, %v1418_v31 }
 0x1ff   :  { %v1394_v42 = vand.u32 2147483647, %v1393_v0  ;;  %v3920_v50 = vadd.f32 %v3214_v30, %v3858_v60  ;;  %v1407_v17 = vadd.s32 3, %v1403_v49  ;;  %v1281_v2 = vsel %vm2911_vm7, 0, %v2910_v15 }
 0x200   :  { %vm1429_vm8 = vcmp.gt.s32.totalorder %v1428_v28, 0  ;;  %v1282_v4 = vsub.s32 32, %v1281_v2  ;;  %v1286_v12 = vsub.s32 4294967266, %v1281_v2  ;;  %v1297_v32 = vsel %vm1212_vm4, %v1296_v35, %v3869_v47 }
 0x201   :  { %v1397_v20 = vmul.f32 %v1396_v3, %v1394_v42  ;;  %v1577_v5 = vmul.u32 %v1570_v16, %v1561_v11  ;;  %vm1579_vm9 = vc.u32 %v3909_v9, %v3911_v27  ;;  %v1580_v59 = vadd.s32 1, %v3912_v36 }
 0x202   :  { %v1430_v61 = vsel %vm1429_vm8, %v1428_v28, 0  ;;  %v1283_v60 = vshll.u32 %v3885_v63, %v1281_v2  ;;  %v1284_v24 = vshrl.u32 %v1266_v33, %v1282_v4  ;;  %v1287_v51 = vadd.s32 127, %v1286_v12 }
 0x203   :  { %v1398_v21 = vxor.u32 2147483648, %v1397_v20  ;;  %v1432_v49 = vand.u32 31, %v1430_v61  ;;  %v1299_v14 = vsel %vm3901_vm6, 0, %v1297_v32  ;;  %v1581_v47 = vsel %vm1579_vm9, %v1580_v59, %v3912_v36 }
 0x204   :  { %v1426_v16 = vor.u32 8388608, %v1425_v25  ;;  %v1285_v35 = vor.u32 %v1284_v24, %v1283_v60  ;;  %v1288_v11 = vshll.u32 %v1287_v51, 23  ;;  %v1582_v39 = vadd.s32 %v1581_v47, %v1577_v5 }
 0x205   :  { %v1399_v38 = vsel %vm1316_vm14, %v1398_v21, %v1397_v20  ;;  %v1433_v63 = vsub.s32 32, %v1432_v49  ;;  %v3937_v3 = vand.u32 3, %v1407_v17  ;;  %v3939_v30 = vadd.s32 3, %v1299_v14 }
 0x206   :  { %v1402_v0 = vsel %vm3874_vm15, %v3759_v58, %v1399_v38  ;;  %v1289_v15 = vor.u32 4788187, %v1288_v11  ;;  %v1583_v34 = vadd.s32 536870912, %v1582_v39  ;;  %v1292_v42 = vcvt.s32.f32 %v1285_v35 }
 0x207   :  { %3306 = vcosq.f32 %v1402_v0  ;;  %v3941_v28 = vshll.u32 %v1426_v16, 8  ;;  %v1733_v36 = vand.u32 2139095040, %v3920_v50  ;;  %v1436_v25 = vshrl.u32 %v3439_v56, %v1433_v63 }
 0x208   :  { %3308 = vsinq.f32 %v1402_v0  ;;  %v1290_v33 = vand.u32 2147483647, %v1289_v15  ;;  %v3944_v13 = vshrl.u32 %v1583_v34, 30  ;;  %v4982_v20 = vmov 2131351028  }
 0x209   :  { %v1439_v2 = vshrl.u32 %v4982_v20, %v1433_v63  ;;  %v3948_v4 = vshrl.u32 %v1430_v61, 5  ;;  %v4983_v17 = vmov 2102212464   ;;  %v1445_v5 = vshrl.u32 %v3442_v8, %v1433_v63 }
 0x20a   :  { %v1442_v12 = vshrl.u32 %v4983_v17, %v1433_v63  ;;  %v1444_v32 = vshll.u32 %v4983_v17, %v1432_v49  ;;  %v1293_v21 = vmul.f32 %v1292_v42, %v1290_v33  ;;  %v1585_v59 = vshll.u32 %v3944_v13, 30 }
 0x20b   :  { %v1435_v60 = vshll.u32 %v3438_v52, %v1432_v49  ;;  %v1438_v24 = vshll.u32 %v3439_v56, %v1432_v49  ;;  %v1441_v51 = vshll.u32 %v4982_v20, %v1432_v49  ;;  %v1447_v14 = vshll.u32 %v3442_v8, %v1432_v49 }
 0x20c   :  { %v1446_v38 = vor.u32 %v1445_v5, %v1444_v32  ;;  %v4984_v61 = vmov 1326507024   ;;  %vm1413_vm10 = vcmp.eq.s32.totalorder %v3937_v3, 2  ;;  %v1294_v16 = vxor.u32 2147483648, %v1293_v21 }
 0x20d   :  { %v1448_v47 = vshrl.u32 %v4984_v61, %v1433_v63  ;;  %v3960_v0 = vsub.s32 %v1582_v39, %v1585_v59  ;;  %v1437_v35 = vor.u32 %v1436_v25, %v1435_v60  ;;  %v1440_v11 = vor.u32 %v1439_v2, %v1438_v24 }
 0x20e   :  { %vm1410_vm11 = vcmp.eq.s32.totalorder %v3937_v3, 0  ;;  %v1578_v15 = vadd.s32 %v3911_v27, %v3909_v9  ;;  %v1443_v34 = vor.u32 %v1442_v12, %v1441_v51  ;;  %v4977_v33 = vand.u32 2147483647, %v3920_v50 }
 0x20f   :  { %v1449_v42 = vor.u32 %v1448_v47, %v1447_v14  ;;  %vm1409_vm12 = vcmp.lt.s32.totalorder %v3937_v3, 2  ;;  %v1295_v49 = vsel %vm1212_vm4, %v1294_v16, %v1293_v21  ;;  %vm1524_vm13 = vcmp.lt.s32.totalorder %v3770_v1, 0 }
 0x210   :  { %v1588_v39 = vsub.s32 0, %v3960_v0  ;;  %vm1453_vm14 = vcmp.lt.s32.totalorder %v3948_v4, 4  ;;  %v1734_v25 = vshrl.u32 %v1733_v36, 23  ;;  %vm1406_vm15 = vweird.f32 %v3759_v58 }
 0x211   :  { %v1298_v9 = vsel %vm3901_vm6, %v3764_v23, %v1295_v49  ;;  %v1434_v27 = vshrl.u32 %v3438_v52, %v1433_v63  ;;  %vm1450_vm0 = vcmp.lt.s32.totalorder %v3948_v4, 1  ;;  %v1459_v2 = vsel %vm1453_vm14, %v1446_v38, 920167782 }
 0x212   :  { %3310 = vcosq.f32 %v1298_v9  ;;  %v2921_v12 = vmin.u32 %v1588_v39, %v3960_v0  ;;  %vm1452_vm1 = vcmp.lt.s32.totalorder %v3948_v4, 3  ;;  %v1458_v36 = vsel %vm1450_vm0, %v1437_v35, %v1440_v11 }
 0x213   :  { %3312 = vsinq.f32 %v1298_v9  ;;  %v1460_v19 = vsel %vm1452_vm1, %v1443_v34, %v1459_v2  ;;  %v1462_v63 = vsel %vm1450_vm0, %v1440_v11, %v1443_v34  ;;  %v1463_v32 = vsel %vm1453_vm14, %v1449_v42, 1326507024 }
 0x214   :  { %v3307_v5 = vpop.eup %3306  ;;  %v4985_v21 = vand.u32 2147483647, %v3770_v1  ;;  %v1590_v60 = vclz %v2921_v12  ;;  %v1608_v24 = vsub.s32 4, %v3944_v13  ;;  %vm1451_vm3 = vcmp.lt.s32.totalorder %v3948_v4, 2 }
 0x215   :  { %v1455_v51 = vsel %vm1453_vm14, %v1443_v34, 2102212464  ;;  %v3309_v14 = vpop.eup %3308  ;;  %v1414_v47 = vxor.u32 2147483648, %v3307_v5  ;;  %v1454_v16 = vsel %vm1450_vm0, %v1434_v27, %v1437_v35  ;;  %v1461_v42 = vsel %vm1451_vm3, %v1458_v36, %v1460_v19 }
 0x216   :  { %vm3992_vm2 = vcmp.le.f32.partialorder %v4985_v21, 0.7853982  ;;  %v1464_v49 = vsel %vm1452_vm1, %v1446_v38, %v1463_v32  ;;  %v1411_v39 = vxor.u32 2147483648, %v3309_v14  ;;  %v2922_v9 = vadd.s32 4294967294, %v1590_v60 }
 0x217   :  { %v1465_v2 = vsel %vm1451_vm3, %v1462_v63, %v1464_v49  ;;  %v2928_v12 = vadd.s32 4294967169, %v1734_v25  ;;  %v1415_v34 = vsel %vm1413_vm10, %v1414_v47, %v3309_v14  ;;  %v1456_v21 = vsel %vm1452_vm1, %v1440_v11, %v1455_v51 }
 0x218   :  { %v4013_v35 = vmul.u32.u64.low %v3941_v28, %v1465_v2  ;;  %v4014_v27 = vmul.u32.u64.high %v3941_v28, %v1465_v2, %v4013_v35  ;;  %v1412_v36 = vsel %vm1410_vm11, %v3307_v5, %v1411_v39  ;;  %vm2923_vm4 = vcmp.lt.s32.totalorder %v2922_v9, 0 }
 0x219   :  { %v4019_v38 = vmul.u32.u64.low %v3941_v28, %v1461_v42  ;;  %v4020_v19 = vmul.u32.u64.high %v3941_v28, %v1461_v42, %v4019_v38  ;;  %v1416_v25 = vsel %vm1409_vm12, %v1412_v36, %v1415_v34  ;;  %v1593_v63 = vsel %vm2923_vm4, 0, %v2922_v9 }
 0x21a   :  { %v1609_v11 = vsel %vm1524_vm13, %v1608_v24, %v3944_v13  ;;  %v1740_v32 = vadd.s32 1, %v2928_v12  ;;  %v1417_v60 = vsel %vm1406_vm15, nan, %v1416_v25  ;;  %v1594_v51 = vsub.s32 32, %v1593_v63 }
 0x21b   :  { %v1598_v5 = vsub.s32 4294967266, %v1593_v63  ;;  %v1457_v14 = vsel %vm1451_vm3, %v1454_v16, %v1456_v21  ;;  %2875 = vst [vmem:[#allocation7 + $0x8] sm:$0xff] %v1417_v60  ;;  %v1304_v47 = vand.u32 3, %v3939_v30  ;;  %v1595_v3 = vshll.u32 %v3960_v0, %v1593_v63 }
 0x21c   :  { %vm1475_vm5 = vc.u32 %v4014_v27, %v4019_v38  ;;  %vm1741_vm6 = vcmp.gt.s32.totalorder %v1740_v32, 0  ;;  %v1596_v42 = vshrl.u32 %v1578_v15, %v1594_v51  ;;  %v1476_v24 = vadd.s32 1, %v4020_v19 }
 0x21d   :  { %v1599_v13 = vadd.s32 127, %v1598_v5  ;;  %v1742_v58 = vsel %vm1741_vm6, %v1740_v32, 0  ;;  %v1611_v49 = vsel %vm3992_vm2, 0, %v1609_v11  ;;  %v1473_v4 = vmul.u32 %v3941_v28, %v1457_v14  ;;  %v978_v5 = vpop.f32.mrf.mxu0 }
 0x21e   :  { %v1737_v16 = vand.u32 8388607, %v4977_v33  ;;  %v1744_v30 = vand.u32 31, %v1742_v58  ;;  %vm1302_vm7 = vweird.f32 %v3764_v23  ;;  %v1597_v0 = vor.u32 %v1596_v42, %v1595_v3 }
 0x21f   :  { %v1600_v39 = vshll.u32 %v1599_v13, 23  ;;  %v1477_v9 = vsel %vm1475_vm5, %v1476_v24, %v4020_v19  ;;  %v3311_v15 = vpop.eup %3310  ;;  %vm1305_vm8 = vcmp.lt.s32.totalorder %v1304_v47, 2  ;;  %vm1306_vm9 = vcmp.eq.s32.totalorder %v1304_v47, 0 }
 0x220   :  { %v1478_v2 = vadd.s32 %v1477_v9, %v1473_v4  ;;  %v1745_v12 = vsub.s32 32, %v1744_v30  ;;  %v3313_v34 = vpop.eup %3312  ;;  %vm1309_vm10 = vcmp.eq.s32.totalorder %v1304_v47, 2  ;;  %v1310_v21 = vxor.u32 2147483648, %v3311_v15 }
 0x221   :  { %v1601_v35 = vor.u32 4788187, %v1600_v39  ;;  %v4044_v28 = vadd.s32 3, %v1611_v49  ;;  %v1307_v36 = vxor.u32 2147483648, %v3313_v34  ;;  %v1738_v63 = vor.u32 8388608, %v1737_v16 }
 0x222   :  { %v1479_v25 = vadd.s32 536870912, %v1478_v2  ;;  %v4046_v11 = vshrl.u32 %v1742_v58, 5  ;;  %v1311_v32 = vsel %vm1309_vm10, %v1310_v21, %v3313_v34  ;;  %v1604_v51 = vcvt.s32.f32 %v1597_v0 }
 0x223   :  { %v1602_v60 = vand.u32 2147483647, %v1601_v35  ;;  %v1747_v19 = vshll.u32 %v3438_v52, %v1744_v30  ;;  %v1308_v14 = vsel %vm1306_vm9, %v3311_v15, %v1307_v36  ;;  %v1748_v42 = vshrl.u32 %v3439_v56, %v1745_v12  ;;  %v3191_v35 = vpop.f32.mrf.mxu0 }
 0x224   :  { %v1480_v3 = vshrl.u32 %v1479_v25, 30  ;;  %v1754_v13 = vshrl.u32 %v4983_v17, %v1745_v12  ;;  %v1312_v24 = vsel %vm1305_vm8, %v1308_v14, %v1311_v32  ;;  %v1750_v4 = vshll.u32 %v3439_v56, %v1744_v30 }
 0x225   :  { %v1605_v49 = vmul.f32 %v1604_v51, %v1602_v60  ;;  %v1751_v58 = vshrl.u32 %v4982_v20, %v1745_v12  ;;  %v1313_v16 = vsel %vm1302_vm7, nan, %v1312_v24  ;;  %v1753_v39 = vshll.u32 %v4982_v20, %v1744_v30 }
 0x226   :  { %v1481_v0 = vshll.u32 %v1480_v3, 30  ;;  %v1757_v9 = vshrl.u32 %v3442_v8, %v1745_v12  ;;  %2874 = vst [vmem:[#allocation7] sm:$0xff] %v1313_v16  ;;  %vm1420_vm11 = vcmp.lt.s32.totalorder %v3780_v44, 0  ;;  %v1756_v47 = vshll.u32 %v4983_v17, %v1744_v30 }
 0x227   :  { %v1606_v15 = vxor.u32 2147483648, %v1605_v49  ;;  %v1759_v34 = vshll.u32 %v3442_v8, %v1744_v30  ;;  %v1760_v21 = vshrl.u32 %v4984_v61, %v1745_v12  ;;  %v1749_v23 = vor.u32 %v1748_v42, %v1747_v19 }
 0x228   :  { %v4063_v36 = vsub.s32 %v1478_v2, %v1481_v0  ;;  %v1755_v25 = vor.u32 %v1754_v13, %v1753_v39  ;;  %v4065_v32 = vshll.u32 %v1738_v63, 8  ;;  %v1752_v51 = vor.u32 %v1751_v58, %v1750_v4  ;;  %v1140_v0 = vpop.f32.mrf.mxu1 }
 0x229   :  { %v1607_v60 = vsel %vm1524_vm13, %v1606_v15, %v1605_v49  ;;  %v1758_v14 = vor.u32 %v1757_v9, %v1756_v47  ;;  %v1761_v24 = vor.u32 %v1760_v21, %v1759_v34  ;;  %v979_v33 = vadd.f32 %v978_v5, %v3723_v29 }
 0x22a   :  { %v1610_v16 = vsel %vm3992_vm2, %v3770_v1, %v1607_v60  ;;  %v1484_v30 = vsub.s32 0, %v4063_v36  ;;  %v997_v2 = vadd.f32 %v3191_v35, %v3727_v41  ;;  %v1504_v19 = vsub.s32 4, %v1480_v3 }
 0x22b   :  { %3314 = vcosq.f32 %v1610_v16  ;;  %v1746_v63 = vshrl.u32 %v3438_v52, %v1745_v12  ;;  %vm1765_vm12 = vcmp.lt.s32.totalorder %v4046_v11, 4  ;;  %vm1762_vm13 = vcmp.lt.s32.totalorder %v4046_v11, 1 }
 0x22c   :  { %3316 = vsinq.f32 %v1610_v16  ;;  %v2917_v42 = vmin.u32 %v1484_v30, %v4063_v36  ;;  %v1767_v13 = vsel %vm1765_vm12, %v1755_v25, 2102212464  ;;  %v1770_v59 = vsel %vm1762_vm13, %v1749_v23, %v1752_v51 }
 0x22d   :  { %v1771_v49 = vsel %vm1765_vm12, %v1758_v14, 920167782  ;;  %v1774_v4 = vsel %vm1762_vm13, %v1752_v51, %v1755_v25  ;;  %v1775_v58 = vsel %vm1765_vm12, %v1761_v24, 1326507024  ;;  %vm1763_vm14 = vcmp.lt.s32.totalorder %v4046_v11, 2 }
 0x22e   :  { %v1486_v29 = vclz %v2917_v42  ;;  %vm1764_vm15 = vcmp.lt.s32.totalorder %v4046_v11, 3  ;;  %v1766_v41 = vsel %vm1762_vm13, %v1746_v63, %v1749_v23  ;;  %v4081_v9 = vadd.f32 %v1140_v0, %v979_v33  ;;  %v3217_v11 = vpop.f32.mrf.mxu1 }
 0x22f   :  { %v1768_v12 = vsel %vm1764_vm15, %v1752_v51, %v1767_v13  ;;  %v1772_v5 = vsel %vm1764_vm15, %v1755_v25, %v1771_v49  ;;  %v1776_v39 = vsel %vm1764_vm15, %v1758_v14, %v1775_v58  ;;  %v1505_v47 = vsel %vm1420_vm11, %v1504_v19, %v1480_v3 }
 0x230   :  { %v2918_v15 = vadd.s32 4294967294, %v1486_v29  ;;  %v1773_v34 = vsel %vm1763_vm14, %v1770_v59, %v1772_v5  ;;  %v1777_v21 = vsel %vm1763_vm14, %v1774_v4, %v1776_v39  ;;  %v1769_v23 = vsel %vm1763_vm14, %v1766_v41, %v1768_v12 }
 0x231   :  { %v4086_v35 = vmul.u32.u64.low %v4065_v32, %v1777_v21  ;;  %v4087_v60 = vmul.u32.u64.high %v4065_v32, %v1777_v21, %v4086_v35  ;;  %v4090_v24 = vmul.u32.u64.low %v4065_v32, %v1773_v34  ;;  %v4091_v16 = vmul.u32.u64.high %v4065_v32, %v1773_v34, %v4090_v24 }
 0x232   :  { %vm2919_vm0 = vcmp.lt.s32.totalorder %v2918_v15, 0  ;;  %v1629_v33 = vand.u32 2139095040, %v4081_v9  ;;  %v1616_v25 = vand.u32 3, %v4044_v28  ;;  %vm4097_vm1 = vcmp.le.f32.partialorder %v1418_v31, 0.7853982 }
 0x233   :  { %v1489_v51 = vsel %vm2919_vm0, 0, %v2918_v15  ;;  %v4101_v14 = vadd.f32 %v3217_v11, %v997_v2  ;;  %v1474_v30 = vadd.s32 %v4019_v38, %v4014_v27  ;;  %v1507_v42 = vsel %vm4097_vm1, 0, %v1505_v47 }
 0x234   :  { %v1490_v19 = vsub.s32 32, %v1489_v51  ;;  %v1494_v63 = vsub.s32 4294967266, %v1489_v51  ;;  %v1785_v13 = vmul.u32 %v4065_v32, %v1769_v23  ;;  %vm1787_vm2 = vc.u32 %v4087_v60, %v4090_v24 }
 0x235   :  { %v1788_v31 = vadd.s32 1, %v4091_v16  ;;  %v1630_v28 = vshrl.u32 %v1629_v33, 23  ;;  %v1491_v59 = vshll.u32 %v4063_v36, %v1489_v51  ;;  %v1626_v4 = vand.u32 2147483647, %v4081_v9 }
 0x236   :  { %v1492_v49 = vshrl.u32 %v1474_v30, %v1490_v19  ;;  %v1495_v2 = vadd.s32 127, %v1494_v63  ;;  %vm1617_vm3 = vcmp.lt.s32.totalorder %v1616_v25, 2  ;;  %v1941_v58 = vand.u32 2139095040, %v4101_v14 }
 0x237   :  { %v1789_v27 = vsel %vm1787_vm2, %v1788_v31, %v4091_v16  ;;  %v2924_v38 = vadd.s32 4294967169, %v1630_v28  ;;  %vm1618_vm4 = vcmp.eq.s32.totalorder %v1616_v25, 0  ;;  %vm1621_vm5 = vcmp.eq.s32.totalorder %v1616_v25, 2 }
 0x238   :  { %v3315_v0 = vpop.eup %3314  ;;  %v1493_v32 = vor.u32 %v1492_v49, %v1491_v59  ;;  %v1496_v29 = vshll.u32 %v1495_v2, 23  ;;  %v1790_v41 = vadd.s32 %v1789_v27, %v1785_v13  ;;  %v1511_v39 = vadd.s32 3, %v1507_v42 }
 0x239   :  { %v3317_v12 = vpop.eup %3316  ;;  %v1622_v5 = vxor.u32 2147483648, %v3315_v0  ;;  %v1636_v36 = vadd.s32 1, %v2924_v38  ;;  %v1633_v21 = vand.u32 8388607, %v1626_v4  ;;  %v1942_v11 = vshrl.u32 %v1941_v58, 23 }
 0x23a   :  { %v1619_v15 = vxor.u32 2147483648, %v3317_v12  ;;  %v1497_v47 = vor.u32 4788187, %v1496_v29  ;;  %v1791_v34 = vadd.s32 536870912, %v1790_v41  ;;  %v1500_v16 = vcvt.s32.f32 %v1493_v32 }
 0x23b   :  { %v1623_v35 = vsel %vm1621_vm5, %v1622_v5, %v3317_v12  ;;  %vm1637_vm6 = vcmp.gt.s32.totalorder %v1636_v36, 0  ;;  %vm1614_vm7 = vweird.f32 %v3770_v1  ;;  %v4119_v31 = vand.u32 3, %v1511_v39 }
 0x23c   :  { %v1620_v23 = vsel %vm1618_vm4, %v3315_v0, %v1619_v15  ;;  %v1498_v33 = vand.u32 2147483647, %v1497_v47  ;;  %v1792_v51 = vshrl.u32 %v1791_v34, 30  ;;  %v1638_v30 = vsel %vm1637_vm6, %v1636_v36, 0 }
 0x23d   :  { %v1624_v19 = vsel %vm1617_vm3, %v1620_v23, %v1623_v35  ;;  %v1640_v63 = vand.u32 31, %v1638_v30  ;;  %v1786_v59 = vadd.s32 %v4090_v24, %v4087_v60  ;;  %v1634_v49 = vor.u32 8388608, %v1633_v21 }
 0x23e   :  { %v1625_v42 = vsel %vm1614_vm7, nan, %v1624_v19  ;;  %v1501_v13 = vmul.f32 %v1500_v16, %v1498_v33  ;;  %v1793_v28 = vshll.u32 %v1792_v51, 30  ;;  %v1938_v27 = vand.u32 2147483647, %v4101_v14 }
 0x23f   :  { %2877 = vst [vmem:[#allocation7 + $0x18] sm:$0xff] %v1625_v42  ;;  %v1641_v2 = vsub.s32 32, %v1640_v63  ;;  %v4125_v0 = vshrl.u32 %v1638_v30, 5  ;;  %v2936_v1 = vadd.s32 4294967169, %v1942_v11  ;;  %v1643_v25 = vshll.u32 %v3438_v52, %v1640_v63 }
 0x240   :  { %v1502_v38 = vxor.u32 2147483648, %v1501_v13  ;;  %v4123_v58 = vsub.s32 %v1790_v41, %v1793_v28  ;;  %v1646_v29 = vshll.u32 %v3439_v56, %v1640_v63  ;;  %vm1732_vm8 = vcmp.lt.s32.totalorder %v3920_v50, 0 }
 0x241   :  { %v1644_v32 = vshrl.u32 %v3439_v56, %v1641_v2  ;;  %v1647_v12 = vshrl.u32 %v4982_v20, %v1641_v2  ;;  %v1649_v41 = vshll.u32 %v4982_v20, %v1640_v63  ;;  %v1650_v5 = vshrl.u32 %v4983_v17, %v1641_v2 }
 0x242   :  { %v1503_v60 = vsel %vm1420_vm11, %v1502_v38, %v1501_v13  ;;  %v1796_v24 = vsub.s32 0, %v4123_v58  ;;  %v1652_v15 = vshll.u32 %v4983_v17, %v1640_v63  ;;  %v1653_v47 = vshrl.u32 %v3442_v8, %v1641_v2 }
 0x243   :  { %v1506_v39 = vsel %vm4097_vm1, %v3780_v44, %v1503_v60  ;;  %v1645_v36 = vor.u32 %v1644_v32, %v1643_v25  ;;  %v1648_v21 = vor.u32 %v1647_v12, %v1646_v29  ;;  %v1651_v35 = vor.u32 %v1650_v5, %v1649_v41 }
 0x244   :  { %3318 = vcosq.f32 %v1506_v39  ;;  %v2929_v34 = vmin.u32 %v1796_v24, %v4123_v58  ;;  %v1654_v16 = vor.u32 %v1653_v47, %v1652_v15  ;;  %v1655_v11 = vshll.u32 %v3442_v8, %v1640_v63 }
 0x245   :  { %3320 = vsinq.f32 %v1506_v39  ;;  %v1656_v23 = vshrl.u32 %v4984_v61, %v1641_v2  ;;  %v4145_v30 = vshll.u32 %v1634_v49, 8  ;;  %v4149_v3 = vand.u32 8388607, %v1938_v27 }
 0x246   :  { %v1798_v33 = vclz %v2929_v34  ;;  %v1948_v19 = vadd.s32 1, %v2936_v1  ;;  %v4990_v42 = vand.u32 2147483647, %v3920_v50  ;;  %v1816_v28 = vsub.s32 4, %v1792_v51 }
 0x247   :  { %v1642_v38 = vshrl.u32 %v3438_v52, %v1641_v2  ;;  %v1657_v63 = vor.u32 %v1656_v23, %v1655_v11  ;;  %vm1658_vm10 = vcmp.lt.s32.totalorder %v4125_v0, 1  ;;  %vm1660_vm11 = vcmp.lt.s32.totalorder %v4125_v0, 3 }
 0x248   :  { %vm4153_vm9 = vcmp.le.f32.partialorder %v4990_v42, 0.7853982  ;;  %v2930_v25 = vadd.s32 4294967294, %v1798_v33  ;;  %vm1661_vm12 = vcmp.lt.s32.totalorder %v4125_v0, 4  ;;  %v1666_v49 = vsel %vm1658_vm10, %v1645_v36, %v1648_v21 }
 0x249   :  { %v1663_v1 = vsel %vm1661_vm12, %v1651_v35, 2102212464  ;;  %v1667_v32 = vsel %vm1661_vm12, %v1654_v16, 920167782  ;;  %v1670_v29 = vsel %vm1658_vm10, %v1648_v21, %v1651_v35  ;;  %v1671_v12 = vsel %vm1661_vm12, %v1657_v63, 1326507024 }
 0x24a   :  { %vm2931_vm13 = vcmp.lt.s32.totalorder %v2930_v25, 0  ;;  %vm1659_vm14 = vcmp.lt.s32.totalorder %v4125_v0, 2  ;;  %v1668_v2 = vsel %vm1660_vm11, %v1651_v35, %v1667_v32  ;;  %v1672_v60 = vsel %vm1660_vm11, %v1654_v16, %v1671_v12 }
 0x24b   :  { %v1801_v24 = vsel %vm2931_vm13, 0, %v2930_v25  ;;  %v1817_v41 = vsel %vm1732_vm8, %v1816_v28, %v1792_v51  ;;  %v1669_v5 = vsel %vm1659_vm14, %v1666_v49, %v1668_v2  ;;  %v1673_v39 = vsel %vm1659_vm14, %v1670_v29, %v1672_v60 }
 0x24c   :  { %v1802_v15 = vsub.s32 32, %v1801_v24  ;;  %v1806_v47 = vsub.s32 4294967266, %v1801_v24  ;;  %v1662_v34 = vsel %vm1658_vm10, %v1642_v38, %v1645_v36  ;;  %v1664_v35 = vsel %vm1660_vm11, %v1648_v21, %v1663_v1  ;;  %v990_v1 = vpop.f32.mrf.mxu0 }
 0x24d   :  { %v4181_v16 = vmul.u32.u64.low %v4145_v30, %v1673_v39  ;;  %v4182_v11 = vmul.u32.u64.high %v4145_v30, %v1673_v39, %v4181_v16  ;;  %v4185_v51 = vmul.u32.u64.low %v4145_v30, %v1669_v5  ;;  %v4186_v23 = vmul.u32.u64.high %v4145_v30, %v1669_v5, %v4185_v51 }
 0x24e   :  { %vm1510_vm15 = vweird.f32 %v3780_v44  ;;  %v1803_v33 = vshll.u32 %v4123_v58, %v1801_v24  ;;  %v1804_v42 = vshrl.u32 %v1786_v59, %v1802_v15  ;;  %v1807_v28 = vadd.s32 127, %v1806_v47 }
 0x24f   :  { %vm1949_vm0 = vcmp.gt.s32.totalorder %v1948_v19, 0  ;;  %vm1513_vm1 = vcmp.lt.s32.totalorder %v4119_v31, 2  ;;  %vm1514_vm2 = vcmp.eq.s32.totalorder %v4119_v31, 0  ;;  %v1665_v36 = vsel %vm1659_vm14, %v1662_v34, %v1664_v35 }
 0x250   :  { %v1950_v21 = vsel %vm1949_vm0, %v1948_v19, 0  ;;  %v1805_v38 = vor.u32 %v1804_v42, %v1803_v33  ;;  %v1808_v63 = vshll.u32 %v1807_v28, 23  ;;  %v1819_v25 = vsel %vm4153_vm9, 0, %v1817_v41 }
 0x251   :  { %v1952_v49 = vand.u32 31, %v1950_v21  ;;  %v3319_v32 = vpop.eup %3318  ;;  %vm1517_vm3 = vcmp.eq.s32.totalorder %v4119_v31, 2  ;;  %vm1683_vm4 = vc.u32 %v4182_v11, %v4185_v51  ;;  %v1684_v59 = vadd.s32 1, %v4186_v23 }
 0x252   :  { %v1946_v58 = vor.u32 8388608, %v4149_v3  ;;  %v3321_v0 = vpop.eup %3320  ;;  %v1518_v29 = vxor.u32 2147483648, %v3319_v32  ;;  %v1809_v19 = vor.u32 4788187, %v1808_v63  ;;  %v1681_v12 = vmul.u32 %v4145_v30, %v1665_v36 }
 0x253   :  { %v1953_v2 = vsub.s32 32, %v1952_v49  ;;  %v1515_v60 = vxor.u32 2147483648, %v3321_v0  ;;  %v1823_v24 = vadd.s32 3, %v1819_v25  ;;  %v1685_v41 = vsel %vm1683_vm4, %v1684_v59, %v4186_v23 }
 0x254   :  { %v991_v5 = vadd.f32 %v990_v1, %v3733_v40  ;;  %v1519_v39 = vsel %vm1517_vm3, %v1518_v29, %v3321_v0  ;;  %v1810_v15 = vand.u32 2147483647, %v1809_v19  ;;  %v1812_v47 = vcvt.s32.f32 %v1805_v38 }
 0x255   :  { %v1686_v34 = vadd.s32 %v1685_v41, %v1681_v12  ;;  %v1516_v35 = vsel %vm1514_vm2, %v3319_v32, %v1515_v60  ;;  %v1951_v3 = vshrl.u32 %v1950_v21, 5  ;;  %v1956_v16 = vshrl.u32 %v3439_v56, %v1953_v2  ;;  %v1152_v41 = vpop.f32.mrf.mxu1 }
 0x256   :  { %v1959_v33 = vshrl.u32 %v4982_v20, %v1953_v2  ;;  %v1520_v30 = vsel %vm1513_vm1, %v1516_v35, %v1519_v39  ;;  %v1813_v42 = vmul.f32 %v1812_v47, %v1810_v15  ;;  %v1962_v23 = vshrl.u32 %v4983_v17, %v1953_v2 }
 0x257   :  { %v1687_v28 = vadd.s32 536870912, %v1686_v34  ;;  %v1521_v40 = vsel %vm1510_vm15, nan, %v1520_v30  ;;  %v1955_v36 = vshll.u32 %v3438_v52, %v1952_v49  ;;  %v1958_v38 = vshll.u32 %v3439_v56, %v1952_v49 }
 0x258   :  { %v1961_v21 = vshll.u32 %v4982_v20, %v1952_v49  ;;  %2876 = vst [vmem:[#allocation7 + $0x10] sm:$0xff] %v1521_v40  ;;  %v1814_v63 = vxor.u32 2147483648, %v1813_v42  ;;  %v1964_v1 = vshll.u32 %v4983_v17, %v1952_v49  ;;  %v1965_v31 = vshrl.u32 %v3442_v8, %v1953_v2 }
 0x259   :  { %v1688_v25 = vshrl.u32 %v1687_v28, 30  ;;  %v1957_v32 = vor.u32 %v1956_v16, %v1955_v36  ;;  %v1960_v59 = vor.u32 %v1959_v33, %v1958_v38  ;;  %v1967_v0 = vshll.u32 %v3442_v8, %v1952_v49 }
 0x25a   :  { %v1968_v44 = vshrl.u32 %v4984_v61, %v1953_v2  ;;  %v1815_v29 = vsel %vm1732_vm8, %v1814_v63, %v1813_v42  ;;  %v1963_v12 = vor.u32 %v1962_v23, %v1961_v21  ;;  %v1966_v60 = vor.u32 %v1965_v31, %v1964_v1 }
 0x25b   :  { %v1689_v19 = vshll.u32 %v1688_v25, 30  ;;  %v1818_v39 = vsel %vm4153_vm9, %v3920_v50, %v1815_v29  ;;  %v4226_v15 = vand.u32 3, %v1823_v24  ;;  %v1986_v35 = vshll.u32 %v1946_v58, 8 }
 0x25c   :  { %v1969_v47 = vor.u32 %v1968_v44, %v1967_v0  ;;  %3322 = vcosq.f32 %v1818_v39  ;;  %vm1970_vm5 = vcmp.lt.s32.totalorder %v1951_v3, 1  ;;  %v4230_v49 = vadd.f32 %v1152_v41, %v991_v5 }
 0x25d   :  { %v4228_v16 = vsub.s32 %v1686_v34, %v1689_v19  ;;  %3324 = vsinq.f32 %v1818_v39  ;;  %v1954_v33 = vshrl.u32 %v3438_v52, %v1953_v2  ;;  %vm1973_vm6 = vcmp.lt.s32.totalorder %v1951_v3, 4 }
 0x25e   :  { %v1978_v30 = vsel %vm1970_vm5, %v1957_v32, %v1960_v59  ;;  %vm1972_vm7 = vcmp.lt.s32.totalorder %v1951_v3, 3  ;;  %v1975_v13 = vsel %vm1973_vm6, %v1963_v12, 2102212464  ;;  %v1979_v28 = vsel %vm1973_vm6, %v1966_v60, 920167782 }
 0x25f   :  { %v1692_v42 = vsub.s32 0, %v4228_v16  ;;  %vm1971_vm8 = vcmp.lt.s32.totalorder %v1951_v3, 2  ;;  %v1980_v24 = vsel %vm1972_vm7, %v1963_v12, %v1979_v28  ;;  %v1982_v23 = vsel %vm1970_vm5, %v1960_v59, %v1963_v12  ;;  %v3194_v12 = vpop.f32.mrf.mxu0 }
 0x260   :  { %v1983_v58 = vsel %vm1973_vm6, %v1969_v47, 1326507024  ;;  %v1974_v40 = vsel %vm1970_vm5, %v1954_v33, %v1957_v32  ;;  %v1981_v5 = vsel %vm1971_vm8, %v1978_v30, %v1980_v24  ;;  %v1976_v38 = vsel %vm1972_vm7, %v1960_v59, %v1975_v13 }
 0x261   :  { %v2925_v34 = vmin.u32 %v1692_v42, %v4228_v16  ;;  %v1984_v36 = vsel %vm1972_vm7, %v1966_v60, %v1983_v58  ;;  %v4237_v21 = vmul.u32.u64.low %v1986_v35, %v1981_v5  ;;  %v4238_v63 = vmul.u32.u64.high %v1986_v35, %v1981_v5, %v4237_v21 }
 0x262   :  { %v1985_v2 = vsel %vm1971_vm8, %v1982_v23, %v1984_v36  ;;  %v1712_v31 = vsub.s32 4, %v1688_v25  ;;  %vm1628_vm9 = vcmp.lt.s32.totalorder %v4081_v9, 0  ;;  %vm4247_vm10 = vcmp.le.f32.partialorder %v1626_v4, 0.7853982 }
 0x263   :  { %v1694_v1 = vclz %v2925_v34  ;;  %v4242_v0 = vmul.u32.u64.low %v1986_v35, %v1985_v2  ;;  %v4243_v44 = vmul.u32.u64.high %v1986_v35, %v1985_v2, %v4242_v0  ;;  %v1977_v29 = vsel %vm1971_vm8, %v1974_v40, %v1976_v38  ;;  %v3220_v40 = vpop.f32.mrf.mxu1 }
 0x264   :  { %v1837_v19 = vand.u32 2139095040, %v4230_v49  ;;  %vm1825_vm11 = vcmp.lt.s32.totalorder %v4226_v15, 2  ;;  %v1996_v60 = vadd.s32 1, %v4238_v63  ;;  %v1834_v41 = vand.u32 2147483647, %v4230_v49 }
 0x265   :  { %v2926_v59 = vadd.s32 4294967294, %v1694_v1  ;;  %v833_v39 = vadd.f32 %v3713_v46, %v3731_v48  ;;  %vm1822_vm12 = vweird.f32 %v3920_v50  ;;  %vm1829_vm13 = vcmp.eq.s32.totalorder %v4226_v15, 2 }
 0x266   :  { %v1713_v4 = vsel %vm1628_vm9, %v1712_v31, %v1688_v25  ;;  %v1838_v3 = vshrl.u32 %v1837_v19, 23  ;;  %v1993_v33 = vmul.u32 %v1986_v35, %v1977_v29  ;;  %vm1995_vm15 = vc.u32 %v4243_v44, %v4237_v21 }
 0x267   :  { %vm2927_vm14 = vcmp.lt.s32.totalorder %v2926_v59, 0  ;;  %v1009_v30 = vadd.f32 %v3194_v12, %v833_v39  ;;  %v1682_v42 = vadd.s32 %v4185_v51, %v4182_v11  ;;  %v1997_v48 = vsel %vm1995_vm15, %v1996_v60, %v4238_v63 }
 0x268   :  { %v1697_v47 = vsel %vm2927_vm14, 0, %v2926_v59  ;;  %v1715_v24 = vsel %vm4247_vm10, 0, %v1713_v4  ;;  %v1998_v23 = vadd.s32 %v1997_v48, %v1993_v33  ;;  %v2932_v25 = vadd.s32 4294967169, %v1838_v3 }
 0x269   :  { %v1698_v13 = vsub.s32 32, %v1697_v47  ;;  %v1702_v46 = vsub.s32 4294967266, %v1697_v47  ;;  %v3323_v28 = vpop.eup %3322  ;;  %v1841_v35 = vand.u32 8388607, %v1834_v41  ;;  %v1699_v5 = vshll.u32 %v4228_v16, %v1697_v47 }
 0x26a   :  { %v3325_v58 = vpop.eup %3324  ;;  %v1830_v34 = vxor.u32 2147483648, %v3323_v28  ;;  %v1999_v38 = vadd.s32 536870912, %v1998_v23  ;;  %v1844_v2 = vadd.s32 1, %v2932_v25  ;;  %v4272_v63 = vadd.f32 %v3220_v40, %v1009_v30 }
 0x26b   :  { %v1700_v36 = vshrl.u32 %v1682_v42, %v1698_v13  ;;  %v1703_v11 = vadd.s32 127, %v1702_v46  ;;  %v1827_v51 = vxor.u32 2147483648, %v3325_v58  ;;  %vm1826_vm0 = vcmp.eq.s32.totalorder %v4226_v15, 0 }
 0x26c   :  { %v1831_v1 = vsel %vm1829_vm13, %v1830_v34, %v3325_v58  ;;  %v1719_v29 = vadd.s32 3, %v1715_v24  ;;  %v2000_v19 = vshrl.u32 %v1999_v38, 30  ;;  %vm1845_vm1 = vcmp.gt.s32.totalorder %v1844_v2, 0 }
 0x26d   :  { %v1701_v31 = vor.u32 %v1700_v36, %v1699_v5  ;;  %v1704_v0 = vshll.u32 %v1703_v11, 23  ;;  %v1828_v59 = vsel %vm1826_vm0, %v3323_v28, %v1827_v51  ;;  %v1842_v60 = vor.u32 8388608, %v1841_v35 }
 0x26e   :  { %v1832_v16 = vsel %vm1825_vm11, %v1828_v59, %v1831_v1  ;;  %v1846_v39 = vsel %vm1845_vm1, %v1844_v2, 0  ;;  %v2001_v3 = vshll.u32 %v2000_v19, 30  ;;  %v2146_v47 = vand.u32 2147483647, %v4272_v63 }
 0x26f   :  { %v1705_v12 = vor.u32 4788187, %v1704_v0  ;;  %v1833_v4 = vsel %vm1822_vm12, nan, %v1832_v16  ;;  %v1708_v30 = vcvt.s32.f32 %v1701_v31  ;;  %v1848_v42 = vand.u32 31, %v1846_v39 }
 0x270   :  { %2879 = vst [vmem:[#allocation7 + $0x28] sm:$0xff] %v1833_v4  ;;  %v4282_v13 = vand.u32 3, %v1719_v29  ;;  %v1994_v46 = vadd.s32 %v4237_v21, %v4243_v44  ;;  %v4286_v15 = vsub.s32 %v1998_v23, %v2001_v3  ;;  %v4288_v24 = vshll.u32 %v1842_v60, 8 }
 0x271   :  { %v1706_v33 = vand.u32 2147483647, %v1705_v12  ;;  %v1849_v28 = vsub.s32 32, %v1848_v42  ;;  %v2149_v50 = vand.u32 2139095040, %v4272_v63  ;;  %vm1940_vm2 = vcmp.lt.s32.totalorder %v4101_v14, 0 }
 0x272   :  { %v2004_v25 = vsub.s32 0, %v4286_v15  ;;  %v4293_v35 = vshrl.u32 %v1846_v39, 5  ;;  %v1851_v58 = vshll.u32 %v3438_v52, %v1848_v42  ;;  %v4298_v34 = vand.u32 8388607, %v2146_v47 }
 0x273   :  { %v1709_v48 = vmul.f32 %v1708_v30, %v1706_v33  ;;  %v1852_v44 = vshrl.u32 %v3439_v56, %v1849_v28  ;;  %v1854_v23 = vshll.u32 %v3439_v56, %v1848_v42  ;;  %v1855_v40 = vshrl.u32 %v4982_v20, %v1849_v28 }
 0x274   :  { %v2937_v5 = vmin.u32 %v2004_v25, %v4286_v15  ;;  %v1857_v36 = vshll.u32 %v4982_v20, %v1848_v42  ;;  %v1858_v11 = vshrl.u32 %v4983_v17, %v1849_v28  ;;  %v1860_v51 = vshll.u32 %v4983_v17, %v1848_v42 }
 0x275   :  { %v1710_v21 = vxor.u32 2147483648, %v1709_v48  ;;  %v1853_v2 = vor.u32 %v1852_v44, %v1851_v58  ;;  %v1856_v1 = vor.u32 %v1855_v40, %v1854_v23  ;;  %v1861_v31 = vshrl.u32 %v3442_v8, %v1849_v28 }
 0x276   :  { %v2006_v59 = vclz %v2937_v5  ;;  %v2024_v29 = vsub.s32 4, %v2000_v19  ;;  %v2150_v16 = vshrl.u32 %v2149_v50, 23  ;;  %v1859_v12 = vor.u32 %v1858_v11, %v1857_v36 }
 0x277   :  { %v1711_v38 = vsel %vm1628_vm9, %v1710_v21, %v1709_v48  ;;  %v1862_v60 = vor.u32 %v1861_v31, %v1860_v51  ;;  %vm1866_vm3 = vcmp.lt.s32.totalorder %v4293_v35, 1  ;;  %v1863_v4 = vshll.u32 %v3442_v8, %v1848_v42 }
 0x278   :  { %v1714_v0 = vsel %vm4247_vm10, %v4081_v9, %v1711_v38  ;;  %v2938_v39 = vadd.s32 4294967294, %v2006_v59  ;;  %v1864_v3 = vshrl.u32 %v4984_v61, %v1849_v28  ;;  %vm4318_vm4 = vcmp.le.f32.partialorder %v1938_v27, 0.7853982 }
 0x279   :  { %3326 = vcosq.f32 %v1714_v0  ;;  %v1850_v32 = vshrl.u32 %v3438_v52, %v1849_v28  ;;  %vm1868_vm5 = vcmp.lt.s32.totalorder %v4293_v35, 3  ;;  %vm1869_vm6 = vcmp.lt.s32.totalorder %v4293_v35, 4 }
 0x27a   :  { %3328 = vsinq.f32 %v1714_v0  ;;  %v1874_v30 = vsel %vm1866_vm3, %v1853_v2, %v1856_v1  ;;  %vm2939_vm7 = vcmp.lt.s32.totalorder %v2938_v39, 0  ;;  %v1865_v48 = vor.u32 %v1864_v3, %v1863_v4 }
 0x27b   :  { %v1871_v42 = vsel %vm1869_vm6, %v1859_v12, 2102212464  ;;  %v1875_v27 = vsel %vm1869_vm6, %v1862_v60, 920167782  ;;  %v2009_v50 = vsel %vm2939_vm7, 0, %v2938_v39  ;;  %v2025_v25 = vsel %vm1940_vm2, %v2024_v29, %v2000_v19 }
 0x27c   :  { %vm1867_vm8 = vcmp.lt.s32.totalorder %v4293_v35, 2  ;;  %v1876_v28 = vsel %vm1868_vm5, %v1859_v12, %v1875_v27  ;;  %v2010_v58 = vsub.s32 32, %v2009_v50  ;;  %v2014_v21 = vsub.s32 4294967266, %v2009_v50 }
 0x27d   :  { %v1870_v44 = vsel %vm1866_vm3, %v1850_v32, %v1853_v2  ;;  %v1878_v23 = vsel %vm1866_vm3, %v1856_v1, %v1859_v12  ;;  %v1872_v40 = vsel %vm1868_vm5, %v1856_v1, %v1871_v42  ;;  %v1877_v5 = vsel %vm1867_vm8, %v1874_v30, %v1876_v28 }
 0x27e   :  { %v1879_v19 = vsel %vm1869_vm6, %v1865_v48, 1326507024  ;;  %v2944_v36 = vadd.s32 4294967169, %v2150_v16  ;;  %v2011_v11 = vshll.u32 %v4286_v15, %v2009_v50  ;;  %v2012_v51 = vshrl.u32 %v1994_v46, %v2010_v58 }
 0x27f   :  { %v2015_v38 = vadd.s32 127, %v2014_v21  ;;  %v1880_v2 = vsel %vm1868_vm5, %v1862_v60, %v1879_v19  ;;  %v4352_v0 = vmul.u32.u64.low %v4288_v24, %v1877_v5  ;;  %v4353_v1 = vmul.u32.u64.high %v4288_v24, %v1877_v5, %v4352_v0 }
 0x280   :  { %v1881_v31 = vsel %vm1867_vm8, %v1878_v23, %v1880_v2  ;;  %v2156_v59 = vadd.s32 1, %v2944_v36  ;;  %v2013_v29 = vor.u32 %v2012_v51, %v2011_v11  ;;  %vm1718_vm9 = vweird.f32 %v4081_v9 }
 0x281   :  { %v2016_v12 = vshll.u32 %v2015_v38, 23  ;;  %v4357_v16 = vmul.u32.u64.low %v4288_v24, %v1881_v31  ;;  %v4358_v39 = vmul.u32.u64.high %v4288_v24, %v1881_v31, %v4357_v16  ;;  %vm1721_vm10 = vcmp.lt.s32.totalorder %v4282_v13, 2 }
 0x282   :  { %vm1722_vm11 = vcmp.eq.s32.totalorder %v4282_v13, 0  ;;  %v1873_v46 = vsel %vm1867_vm8, %v1870_v44, %v1872_v40  ;;  %vm2157_vm12 = vcmp.gt.s32.totalorder %v2156_v59, 0  ;;  %vm1725_vm13 = vcmp.eq.s32.totalorder %v4282_v13, 2 }
 0x283   :  { %v2017_v15 = vor.u32 4788187, %v2016_v12  ;;  %v2027_v60 = vsel %vm4318_vm4, 0, %v2025_v25  ;;  %v2158_v4 = vsel %vm2157_vm12, %v2156_v59, 0  ;;  %v1892_v3 = vadd.s32 1, %v4353_v1 }
 0x284   :  { %v2154_v32 = vor.u32 8388608, %v4298_v34  ;;  %v2160_v30 = vand.u32 31, %v2158_v4  ;;  %v825_v48 = vadd.f32 %v3717_v10, %v3735_v55  ;;  %v2020_v35 = vcvt.s32.f32 %v2013_v29 }
 0x285   :  { %v2018_v27 = vand.u32 2147483647, %v2017_v15  ;;  %v1889_v50 = vmul.u32 %v4288_v24, %v1873_v46  ;;  %vm1891_vm14 = vc.u32 %v4358_v39, %v4352_v0  ;;  %v2031_v25 = vadd.s32 3, %v2027_v60  ;;  %v1002_v15 = vpop.f32.mrf.mxu0 }
 0x286   :  { %v3327_v42 = vpop.eup %3326  ;;  %v1893_v21 = vsel %vm1891_vm14, %v1892_v3, %v4353_v1  ;;  %v2161_v44 = vsub.s32 32, %v2160_v30  ;;  %v4376_v5 = vshrl.u32 %v2158_v4, 5  ;;  %v2163_v55 = vshll.u32 %v3438_v52, %v2160_v30 }
 0x287   :  { %v3329_v28 = vpop.eup %3328  ;;  %v1726_v58 = vxor.u32 2147483648, %v3327_v42  ;;  %v2021_v34 = vmul.f32 %v2020_v35, %v2018_v27  ;;  %v1894_v40 = vadd.s32 %v1893_v21, %v1889_v50  ;;  %v2166_v38 = vshll.u32 %v3439_v56, %v2160_v30 }
 0x288   :  { %v1723_v23 = vxor.u32 2147483648, %v3329_v28  ;;  %v2164_v24 = vshrl.u32 %v3439_v56, %v2161_v44  ;;  %v2167_v19 = vshrl.u32 %v4982_v20, %v2161_v44  ;;  %v2169_v1 = vshll.u32 %v4982_v20, %v2160_v30 }
 0x289   :  { %v1727_v10 = vsel %vm1725_vm13, %v1726_v58, %v3329_v28  ;;  %v2022_v11 = vxor.u32 2147483648, %v2021_v34  ;;  %v1895_v51 = vadd.s32 536870912, %v1894_v40  ;;  %v2170_v59 = vshrl.u32 %v4983_v17, %v2161_v44 }
 0x28a   :  { %v1724_v36 = vsel %vm1722_vm11, %v3327_v42, %v1723_v23  ;;  %v2165_v31 = vor.u32 %v2164_v24, %v2163_v55  ;;  %v2168_v46 = vor.u32 %v2167_v19, %v2166_v38  ;;  %v2172_v4 = vshll.u32 %v4983_v17, %v2160_v30 }
 0x28b   :  { %v1728_v2 = vsel %vm1721_vm10, %v1724_v36, %v1727_v10  ;;  %v2023_v12 = vsel %vm1940_vm2, %v2022_v11, %v2021_v34  ;;  %v4394_v16 = vshrl.u32 %v1895_v51, 30  ;;  %v2171_v60 = vor.u32 %v2170_v59, %v2169_v1  ;;  %v1164_v10 = vpop.f32.mrf.mxu1 }
 0x28c   :  { %v1729_v29 = vsel %vm1718_vm9, nan, %v1728_v2  ;;  %v2026_v13 = vsel %vm4318_vm4, %v4101_v14, %v2023_v12  ;;  %v2173_v3 = vshrl.u32 %v3442_v8, %v2161_v44  ;;  %v2175_v42 = vshll.u32 %v3442_v8, %v2160_v30 }
 0x28d   :  { %2878 = vst [vmem:[#allocation7 + $0x20] sm:$0xff] %v1729_v29  ;;  %3330 = vcosq.f32 %v2026_v13  ;;  %v1897_v9 = vshll.u32 %v4394_v16, 30  ;;  %v2176_v27 = vshrl.u32 %v4984_v61, %v2161_v44  ;;  %v1003_v50 = vadd.f32 %v1002_v15, %v825_v48 }
 0x28e   :  { %3332 = vsinq.f32 %v2026_v13  ;;  %v2174_v35 = vor.u32 %v2173_v3, %v2172_v4  ;;  %v849_v28 = vadd.f32 %v3721_v22, %v3739_v62  ;;  %v4406_v33 = vand.u32 3, %v2031_v25 }
 0x28f   :  { %v4408_v58 = vsub.s32 %v1894_v40, %v1897_v9  ;;  %v2177_v21 = vor.u32 %v2176_v27, %v2175_v42  ;;  %vm2178_vm15 = vcmp.lt.s32.totalorder %v4376_v5, 1  ;;  %v2162_v23 = vshrl.u32 %v3438_v52, %v2161_v44  ;;  %v3197_v44 = vpop.f32.mrf.mxu0 }
 0x290   :  { %vm2181_vm0 = vcmp.lt.s32.totalorder %v4376_v5, 4  ;;  %v2186_v30 = vsel %vm2178_vm15, %v2165_v31, %v2168_v46  ;;  %v2194_v34 = vshll.u32 %v2154_v32, 8  ;;  %vm2180_vm1 = vcmp.lt.s32.totalorder %v4376_v5, 3 }
 0x291   :  { %v1900_v48 = vsub.s32 0, %v4408_v58  ;;  %v2183_v22 = vsel %vm2181_vm0, %v2171_v60, 2102212464  ;;  %v2187_v62 = vsel %vm2181_vm0, %v2174_v35, 920167782  ;;  %vm2179_vm2 = vcmp.lt.s32.totalorder %v4376_v5, 2 }
 0x292   :  { %v2188_v25 = vsel %vm2180_vm1, %v2171_v60, %v2187_v62  ;;  %v2191_v40 = vsel %vm2181_vm0, %v2177_v21, 1326507024  ;;  %v4418_v55 = vadd.f32 %v1164_v10, %v1003_v50  ;;  %v2182_v19 = vsel %vm2178_vm15, %v2162_v23, %v2165_v31 }
 0x293   :  { %v2933_v24 = vmin.u32 %v1900_v48, %v4408_v58  ;;  %v2189_v32 = vsel %vm2179_vm2, %v2186_v30, %v2188_v25  ;;  %v2190_v36 = vsel %vm2178_vm15, %v2168_v46, %v2171_v60  ;;  %v2184_v11 = vsel %vm2180_vm1, %v2168_v46, %v2183_v22 }
 0x294   :  { %v2192_v51 = vsel %vm2180_vm1, %v2174_v35, %v2191_v40  ;;  %v4427_v38 = vmul.u32.u64.low %v2194_v34, %v2189_v32  ;;  %v4428_v2 = vmul.u32.u64.high %v2194_v34, %v2189_v32, %v4427_v38  ;;  %vm1836_vm3 = vcmp.lt.s32.totalorder %v4230_v49, 0 }
 0x295   :  { %v1902_v1 = vclz %v2933_v24  ;;  %v1021_v59 = vadd.f32 %v3197_v44, %v849_v28  ;;  %vm4434_vm4 = vcmp.le.f32.partialorder %v1834_v41, 0.7853982  ;;  %v1920_v29 = vsub.s32 4, %v4394_v16  ;;  %v3223_v41 = vpop.f32.mrf.mxu1 }
 0x296   :  { %v2193_v12 = vsel %vm2179_vm2, %v2190_v36, %v2192_v51  ;;  %v2045_v46 = vand.u32 2139095040, %v4418_v55  ;;  %vm2030_vm5 = vweird.f32 %v4101_v14  ;;  %v2185_v13 = vsel %vm2179_vm2, %v2182_v19, %v2184_v11 }
 0x297   :  { %v2934_v15 = vadd.s32 4294967294, %v1902_v1  ;;  %v4445_v60 = vmul.u32.u64.low %v2194_v34, %v2193_v12  ;;  %v4446_v4 = vmul.u32.u64.high %v2194_v34, %v2193_v12, %v4445_v60  ;;  %vm2033_vm6 = vcmp.lt.s32.totalorder %v4406_v33, 2 }
 0x298   :  { %vm2034_vm7 = vcmp.eq.s32.totalorder %v4406_v33, 0  ;;  %vm2037_vm8 = vcmp.eq.s32.totalorder %v4406_v33, 2  ;;  %v2046_v3 = vshrl.u32 %v2045_v46, 23  ;;  %v1890_v9 = vadd.s32 %v4352_v0, %v4358_v39 }
 0x299   :  { %vm2935_vm9 = vcmp.lt.s32.totalorder %v2934_v15, 0  ;;  %v2204_v42 = vadd.s32 1, %v4428_v2  ;;  %v4454_v27 = vadd.f32 %v3223_v41, %v1021_v59  ;;  %v1921_v50 = vsel %vm1836_vm3, %v1920_v29, %v4394_v16 }
 0x29a   :  { %v3331_v5 = vpop.eup %3330  ;;  %v1905_v35 = vsel %vm2935_vm9, 0, %v2934_v15  ;;  %v2201_v28 = vmul.u32 %v2194_v34, %v2185_v13  ;;  %v2940_v21 = vadd.s32 4294967169, %v2046_v3  ;;  %v2042_v22 = vand.u32 2147483647, %v4418_v55 }
 0x29b   :  { %v3333_v23 = vpop.eup %3332  ;;  %v2038_v30 = vxor.u32 2147483648, %v3331_v5  ;;  %v1906_v10 = vsub.s32 32, %v1905_v35  ;;  %v1910_v48 = vsub.s32 4294967266, %v1905_v35  ;;  %v1907_v39 = vshll.u32 %v4408_v58, %v1905_v35 }
 0x29c   :  { %v2035_v0 = vxor.u32 2147483648, %v3333_v23  ;;  %vm2203_vm10 = vc.u32 %v4446_v4, %v4427_v38  ;;  %v2052_v62 = vadd.s32 1, %v2940_v21  ;;  %v1923_v24 = vsel %vm4434_vm4, 0, %v1921_v50 }
 0x29d   :  { %v2039_v25 = vsel %vm2037_vm8, %v2038_v30, %v3333_v23  ;;  %v1908_v40 = vshrl.u32 %v1890_v9, %v1906_v10  ;;  %v1911_v16 = vadd.s32 127, %v1910_v48  ;;  %v2205_v34 = vsel %vm2203_vm10, %v2204_v42, %v4428_v2 }
 0x29e   :  { %v2036_v44 = vsel %vm2034_vm7, %v3331_v5, %v2035_v0  ;;  %v2206_v19 = vadd.s32 %v2205_v34, %v2201_v28  ;;  %vm2053_vm11 = vcmp.gt.s32.totalorder %v2052_v62, 0  ;;  %v2049_v2 = vand.u32 8388607, %v2042_v22 }
 0x29f   :  { %v2040_v58 = vsel %vm2033_vm6, %v2036_v44, %v2039_v25  ;;  %v1909_v32 = vor.u32 %v1908_v40, %v1907_v39  ;;  %v1912_v36 = vshll.u32 %v1911_v16, 23  ;;  %v2054_v11 = vsel %vm2053_vm11, %v2052_v62, 0 }
 0x2a0   :  { %v2041_v51 = vsel %vm2030_vm5, nan, %v2040_v58  ;;  %v2207_v1 = vadd.s32 536870912, %v2206_v19  ;;  %v2056_v59 = vand.u32 31, %v2054_v11  ;;  %v4476_v12 = vadd.s32 3, %v1923_v24 }
 0x2a1   :  { %2881 = vst [vmem:[#allocation7 + $0x38] sm:$0xff] %v2041_v51  ;;  %v1913_v29 = vor.u32 4788187, %v1912_v36  ;;  %v1916_v13 = vcvt.s32.f32 %v1909_v32  ;;  %v2354_v60 = vand.u32 2147483647, %v4454_v27  ;;  %v2357_v41 = vand.u32 2139095040, %v4454_v27 }
 0x2a2   :  { %v4478_v46 = vshrl.u32 %v2207_v1, 30  ;;  %v2057_v15 = vsub.s32 32, %v2056_v59  ;;  %v2050_v3 = vor.u32 8388608, %v2049_v2  ;;  %v2059_v9 = vshll.u32 %v3438_v52, %v2056_v59 }
 0x2a3   :  { %v1914_v33 = vand.u32 2147483647, %v1913_v29  ;;  %v2062_v23 = vshll.u32 %v3439_v56, %v2056_v59  ;;  %v2065_v30 = vshll.u32 %v4982_v20, %v2056_v59  ;;  %v2055_v0 = vshrl.u32 %v2054_v11, 5 }
 0x2a4   :  { %v2209_v14 = vshll.u32 %v4478_v46, 30  ;;  %v2060_v42 = vshrl.u32 %v3439_v56, %v2057_v15  ;;  %v2063_v35 = vshrl.u32 %v4982_v20, %v2057_v15  ;;  %v2066_v50 = vshrl.u32 %v4983_v17, %v2057_v15 }
 0x2a5   :  { %v1917_v5 = vmul.f32 %v1916_v13, %v1914_v33  ;;  %v2069_v28 = vshrl.u32 %v3442_v8, %v2057_v15  ;;  %v2072_v10 = vshrl.u32 %v4984_v61, %v2057_v15  ;;  %v2068_v39 = vshll.u32 %v4983_v17, %v2056_v59 }
 0x2a6   :  { %v4488_v21 = vsub.s32 %v2206_v19, %v2209_v14  ;;  %v2071_v62 = vshll.u32 %v3442_v8, %v2056_v59  ;;  %v2061_v40 = vor.u32 %v2060_v42, %v2059_v9  ;;  %v2064_v16 = vor.u32 %v2063_v35, %v2062_v23 }
 0x2a7   :  { %v1918_v48 = vxor.u32 2147483648, %v1917_v5  ;;  %v2067_v34 = vor.u32 %v2066_v50, %v2065_v30  ;;  %v2070_v24 = vor.u32 %v2069_v28, %v2068_v39  ;;  %v2090_v19 = vshll.u32 %v2050_v3, 8 }
 0x2a8   :  { %v2212_v25 = vsub.s32 0, %v4488_v21  ;;  %v2358_v58 = vshrl.u32 %v2357_v41, 23  ;;  %vm2148_vm12 = vcmp.lt.s32.totalorder %v4272_v63, 0  ;;  %v2232_v11 = vsub.s32 4, %v4478_v46 }
 0x2a9   :  { %v1919_v44 = vsel %vm1836_vm3, %v1918_v48, %v1917_v5  ;;  %v2073_v51 = vor.u32 %v2072_v10, %v2071_v62  ;;  %v2058_v1 = vshrl.u32 %v3438_v52, %v2057_v15  ;;  %vm2074_vm13 = vcmp.lt.s32.totalorder %v2055_v0, 1 }
 0x2aa   :  { %v1922_v32 = vsel %vm4434_vm4, %v4230_v49, %v1919_v44  ;;  %v2945_v36 = vmin.u32 %v2212_v25, %v4488_v21  ;;  %vm2077_vm14 = vcmp.lt.s32.totalorder %v2055_v0, 4  ;;  %v2082_v29 = vsel %vm2074_vm13, %v2061_v40, %v2064_v16 }
 0x2ab   :  { %3334 = vcosq.f32 %v1922_v32  ;;  %v2079_v59 = vsel %vm2077_vm14, %v2067_v34, 2102212464  ;;  %vm2075_vm15 = vcmp.lt.s32.totalorder %v2055_v0, 2  ;;  %vm2076_vm0 = vcmp.lt.s32.totalorder %v2055_v0, 3 }
 0x2ac   :  { %3336 = vsinq.f32 %v1922_v32  ;;  %v2214_v2 = vclz %v2945_v36  ;;  %v2083_v31 = vsel %vm2077_vm14, %v2070_v24, 920167782  ;;  %v2086_v33 = vsel %vm2074_vm13, %v2064_v16, %v2067_v34 }
 0x2ad   :  { %v2078_v41 = vsel %vm2074_vm13, %v2058_v1, %v2061_v40  ;;  %v2084_v14 = vsel %vm2076_vm0, %v2067_v34, %v2083_v31  ;;  %v2087_v3 = vsel %vm2077_vm14, %v2073_v51, 1326507024  ;;  %v2080_v9 = vsel %vm2076_vm0, %v2064_v16, %v2079_v59  ;;  %v1014_v1 = vpop.f32.mrf.mxu0 }
 0x2ae   :  { %v2946_v13 = vadd.s32 4294967294, %v2214_v2  ;;  %v2085_v42 = vsel %vm2075_vm15, %v2082_v29, %v2084_v14  ;;  %v2088_v5 = vsel %vm2076_vm0, %v2070_v24, %v2087_v3  ;;  %v2952_v35 = vadd.s32 4294967169, %v2358_v58 }
 0x2af   :  { %v2089_v15 = vsel %vm2075_vm15, %v2086_v33, %v2088_v5  ;;  %v4507_v50 = vmul.u32.u64.low %v2090_v19, %v2085_v42  ;;  %v4508_v28 = vmul.u32.u64.high %v2090_v19, %v2085_v42, %v4507_v50  ;;  %v2202_v23 = vadd.s32 %v4427_v38, %v4446_v4 }
 0x2b0   :  { %vm2947_vm1 = vcmp.lt.s32.totalorder %v2946_v13, 0  ;;  %v4513_v10 = vmul.u32.u64.low %v2090_v19, %v2089_v15  ;;  %v4514_v48 = vmul.u32.u64.high %v2090_v19, %v2089_v15, %v4513_v10  ;;  %v2081_v25 = vsel %vm2075_vm15, %v2078_v41, %v2080_v9 }
 0x2b1   :  { %v2217_v30 = vsel %vm2947_vm1, 0, %v2946_v13  ;;  %v2364_v40 = vadd.s32 1, %v2952_v35  ;;  %v1928_v16 = vand.u32 3, %v4476_v12  ;;  %v2233_v44 = vsel %vm2148_vm12, %v2232_v11, %v4478_v46 }
 0x2b2   :  { %v2218_v39 = vsub.s32 32, %v2217_v30  ;;  %v2222_v62 = vsub.s32 4294967266, %v2217_v30  ;;  %v2219_v34 = vshll.u32 %v4488_v21, %v2217_v30  ;;  %v2100_v38 = vadd.s32 1, %v4508_v28 }
 0x2b3   :  { %vm2365_vm2 = vcmp.gt.s32.totalorder %v2364_v40, 0  ;;  %vm1926_vm3 = vweird.f32 %v4230_v49  ;;  %v2097_v4 = vmul.u32 %v2090_v19, %v2081_v25  ;;  %vm2099_vm4 = vc.u32 %v4514_v48, %v4507_v50 }
 0x2b4   :  { %v2220_v24 = vshrl.u32 %v2202_v23, %v2218_v39  ;;  %v2223_v58 = vadd.s32 127, %v2222_v62  ;;  %v2361_v12 = vand.u32 8388607, %v2354_v60  ;;  %v2366_v0 = vsel %vm2365_vm2, %v2364_v40, 0 }
 0x2b5   :  { %vm4530_vm5 = vcmp.le.f32.partialorder %v2146_v47, 0.7853982  ;;  %v2101_v36 = vsel %vm2099_vm4, %v2100_v38, %v4508_v28  ;;  %vm1929_vm6 = vcmp.lt.s32.totalorder %v1928_v16, 2  ;;  %v2368_v19 = vand.u32 31, %v2366_v0 }
 0x2b6   :  { %v2221_v46 = vor.u32 %v2220_v24, %v2219_v34  ;;  %v2224_v32 = vshll.u32 %v2223_v58, 23  ;;  %v2102_v11 = vadd.s32 %v2101_v36, %v2097_v4  ;;  %v841_v51 = vadd.f32 %v3725_v26, %v3741_v7 }
 0x2b7   :  { %vm1930_vm7 = vcmp.eq.s32.totalorder %v1928_v16, 0  ;;  %vm1933_vm8 = vcmp.eq.s32.totalorder %v1928_v16, 2  ;;  %v2235_v47 = vsel %vm4530_vm5, 0, %v2233_v44  ;;  %v2362_v13 = vor.u32 8388608, %v2361_v12 }
 0x2b8   :  { %v3335_v2 = vpop.eup %3334  ;;  %v2225_v59 = vor.u32 4788187, %v2224_v32  ;;  %v2103_v33 = vadd.s32 536870912, %v2102_v11  ;;  %v2369_v41 = vsub.s32 32, %v2368_v19  ;;  %v2228_v9 = vcvt.s32.f32 %v2221_v46  ;;  %v1176_v32 = vpop.f32.mrf.mxu1 }
 0x2b9   :  { %v3337_v29 = vpop.eup %3336  ;;  %v1934_v31 = vxor.u32 2147483648, %v3335_v2  ;;  %v1015_v42 = vadd.f32 %v1014_v1, %v841_v51  ;;  %v2371_v26 = vshll.u32 %v3438_v52, %v2368_v19  ;;  %v2367_v62 = vshrl.u32 %v2366_v0, 5 }
 0x2ba   :  { %v1931_v14 = vxor.u32 2147483648, %v3337_v29  ;;  %v2226_v3 = vand.u32 2147483647, %v2225_v59  ;;  %v4539_v35 = vshrl.u32 %v2103_v33, 30  ;;  %v2372_v7 = vshrl.u32 %v3439_v56, %v2369_v41 }
 0x2bb   :  { %v1935_v5 = vsel %vm1933_vm8, %v1934_v31, %v3337_v29  ;;  %v2375_v23 = vshrl.u32 %v4982_v20, %v2369_v41  ;;  %v2378_v30 = vshrl.u32 %v4983_v17, %v2369_v41  ;;  %v2374_v25 = vshll.u32 %v3439_v56, %v2368_v19 }
 0x2bc   :  { %v1932_v15 = vsel %vm1930_vm7, %v3335_v2, %v1931_v14  ;;  %v2229_v28 = vmul.f32 %v2228_v9, %v2226_v3  ;;  %v2105_v39 = vshll.u32 %v4539_v35, 30  ;;  %v2373_v44 = vor.u32 %v2372_v7, %v2371_v26 }
 0x2bd   :  { %v1936_v10 = vsel %vm1929_vm6, %v1932_v15, %v1935_v5  ;;  %v2377_v24 = vshll.u32 %v4982_v20, %v2368_v19  ;;  %v2376_v38 = vor.u32 %v2375_v23, %v2374_v25  ;;  %v2380_v4 = vshll.u32 %v4983_v17, %v2368_v19  ;;  %v3200_v23 = vpop.f32.mrf.mxu0 }
 0x2be   :  { %v1937_v40 = vsel %vm1926_vm3, nan, %v1936_v10  ;;  %v2230_v34 = vxor.u32 2147483648, %v2229_v28  ;;  %v4552_v58 = vsub.s32 %v2102_v11, %v2105_v39  ;;  %v2381_v16 = vshrl.u32 %v3442_v8, %v2369_v41 }
 0x2bf   :  { %2880 = vst [vmem:[#allocation7 + $0x30] sm:$0xff] %v1937_v40  ;;  %v2379_v0 = vor.u32 %v2378_v30, %v2377_v24  ;;  %v2383_v46 = vshll.u32 %v3442_v8, %v2368_v19  ;;  %v2384_v49 = vshrl.u32 %v4984_v61, %v2369_v41  ;;  %v2239_v11 = vadd.s32 3, %v2235_v47 }
 0x2c0   :  { %v2231_v12 = vsel %vm2148_vm12, %v2230_v34, %v2229_v28  ;;  %v2108_v51 = vsub.s32 0, %v4552_v58  ;;  %v2382_v1 = vor.u32 %v2381_v16, %v2380_v4  ;;  %vm2044_vm9 = vcmp.lt.s32.totalorder %v4418_v55, 0 }
 0x2c1   :  { %v2234_v36 = vsel %vm4530_vm5, %v4272_v63, %v2231_v12  ;;  %v2385_v2 = vor.u32 %v2384_v49, %v2383_v46  ;;  %v2402_v59 = vshll.u32 %v2362_v13, 8  ;;  %v4565_v29 = vadd.f32 %v1176_v32, %v1015_v42  ;;  %v3226_v32 = vpop.f32.mrf.mxu1 }
 0x2c2   :  { %3338 = vcosq.f32 %v2234_v36  ;;  %v2941_v19 = vmin.u32 %v2108_v51, %v4552_v58  ;;  %vm2386_vm10 = vcmp.lt.s32.totalorder %v2367_v62, 1  ;;  %vm2389_vm11 = vcmp.lt.s32.totalorder %v2367_v62, 4 }
 0x2c3   :  { %3340 = vsinq.f32 %v2234_v36  ;;  %v2370_v31 = vshrl.u32 %v3438_v52, %v2369_v41  ;;  %v2391_v21 = vsel %vm2389_vm11, %v2379_v0, 2102212464  ;;  %v2394_v33 = vsel %vm2386_vm10, %v2373_v44, %v2376_v38 }
 0x2c4   :  { %v2395_v47 = vsel %vm2389_vm11, %v2382_v1, 920167782  ;;  %v2110_v14 = vclz %v2941_v19  ;;  %vm2387_vm12 = vcmp.lt.s32.totalorder %v2367_v62, 2  ;;  %vm2388_vm13 = vcmp.lt.s32.totalorder %v2367_v62, 3 }
 0x2c5   :  { %v2398_v3 = vsel %vm2386_vm10, %v2376_v38, %v2379_v0  ;;  %v2390_v9 = vsel %vm2386_vm10, %v2370_v31, %v2373_v44  ;;  %v2392_v5 = vsel %vm2388_vm13, %v2376_v38, %v2391_v21  ;;  %v2396_v26 = vsel %vm2388_vm13, %v2379_v0, %v2395_v47 }
 0x2c6   :  { %v2399_v13 = vsel %vm2389_vm11, %v2385_v2, 1326507024  ;;  %vm4571_vm14 = vcmp.le.f32.partialorder %v2042_v22, 0.7853982  ;;  %v2942_v7 = vadd.s32 4294967294, %v2110_v14  ;;  %v2128_v41 = vsub.s32 4, %v4539_v35 }
 0x2c7   :  { %v2397_v15 = vsel %vm2387_vm12, %v2394_v33, %v2396_v26  ;;  %v2400_v28 = vsel %vm2388_vm13, %v2382_v1, %v2399_v13  ;;  %v865_v25 = vadd.f32 %v3729_v43, %v3747_v18  ;;  %v2393_v22 = vsel %vm2387_vm12, %v2390_v9, %v2392_v5 }
 0x2c8   :  { %v2401_v30 = vsel %vm2387_vm12, %v2398_v3, %v2400_v28  ;;  %v4578_v10 = vmul.u32.u64.low %v2402_v59, %v2397_v15  ;;  %v4579_v39 = vmul.u32.u64.high %v2402_v59, %v2397_v15, %v4578_v10  ;;  %vm2943_vm15 = vcmp.lt.s32.totalorder %v2942_v7, 0 }
 0x2c9   :  { %v4585_v40 = vmul.u32.u64.low %v2402_v59, %v2401_v30  ;;  %v4586_v34 = vmul.u32.u64.high %v2402_v59, %v2401_v30, %v4585_v40  ;;  %v2240_v44 = vand.u32 3, %v2239_v11  ;;  %v2113_v24 = vsel %vm2943_vm15, 0, %v2942_v7 }
 0x2ca   :  { %v2253_v38 = vand.u32 2139095040, %v4565_v29  ;;  %v1033_v4 = vadd.f32 %v3200_v23, %v865_v25  ;;  %v2098_v16 = vadd.s32 %v4507_v50, %v4514_v48  ;;  %v2114_v12 = vsub.s32 32, %v2113_v24 }
 0x2cb   :  { %v2118_v0 = vsub.s32 4294967266, %v2113_v24  ;;  %v2129_v43 = vsel %vm2044_vm9, %v2128_v41, %v4539_v35  ;;  %v2409_v18 = vmul.u32 %v2402_v59, %v2393_v22  ;;  %v2412_v62 = vadd.s32 1, %v4579_v39 }
 0x2cc   :  { %v2250_v46 = vand.u32 2147483647, %v4565_v29  ;;  %v2254_v49 = vshrl.u32 %v2253_v38, 23  ;;  %v2115_v36 = vshll.u32 %v4552_v58, %v2113_v24  ;;  %v2116_v11 = vshrl.u32 %v2098_v16, %v2114_v12 }
 0x2cd   :  { %v2119_v51 = vadd.s32 127, %v2118_v0  ;;  %vm2411_vm0 = vc.u32 %v4586_v34, %v4578_v10  ;;  %vm2241_vm1 = vcmp.lt.s32.totalorder %v2240_v44, 2  ;;  %v4600_v1 = vadd.f32 %v3226_v32, %v1033_v4 }
 0x2ce   :  { %v2413_v50 = vsel %vm2411_vm0, %v2412_v62, %v4579_v39  ;;  %v2948_v48 = vadd.s32 4294967169, %v2254_v49  ;;  %vm2242_vm2 = vcmp.eq.s32.totalorder %v2240_v44, 0  ;;  %v2117_v2 = vor.u32 %v2116_v11, %v2115_v36 }
 0x2cf   :  { %v3339_v35 = vpop.eup %3338  ;;  %v2120_v59 = vshll.u32 %v2119_v51, 23  ;;  %v2414_v19 = vadd.s32 %v2413_v50, %v2409_v18  ;;  %vm2245_vm3 = vcmp.eq.s32.totalorder %v2240_v44, 2  ;;  %v2131_v58 = vsel %vm4571_vm14, 0, %v2129_v43 }
 0x2d0   :  { %v3341_v31 = vpop.eup %3340  ;;  %v2246_v21 = vxor.u32 2147483648, %v3339_v35  ;;  %v2260_v33 = vadd.s32 1, %v2948_v48  ;;  %v2257_v9 = vand.u32 8388607, %v2250_v46  ;;  %v2124_v26 = vcvt.s32.f32 %v2117_v2 }
 0x2d1   :  { %v2243_v47 = vxor.u32 2147483648, %v3341_v31  ;;  %v2121_v14 = vor.u32 4788187, %v2120_v59  ;;  %v2415_v3 = vadd.s32 536870912, %v2414_v19  ;;  %v2565_v13 = vand.u32 2139095040, %v4600_v1 }
 0x2d2   :  { %v2247_v5 = vsel %vm2245_vm3, %v2246_v21, %v3341_v31  ;;  %vm2261_vm4 = vcmp.gt.s32.totalorder %v2260_v33, 0  ;;  %vm2238_vm5 = vweird.f32 %v4272_v63  ;;  %v2135_v40 = vadd.s32 3, %v2131_v58 }
 0x2d3   :  { %v2244_v7 = vsel %vm2242_vm2, %v3339_v35, %v2243_v47  ;;  %v2122_v41 = vand.u32 2147483647, %v2121_v14  ;;  %v4608_v15 = vshrl.u32 %v2415_v3, 30  ;;  %v2262_v28 = vsel %vm2261_vm4, %v2260_v33, 0 }
 0x2d4   :  { %v2248_v23 = vsel %vm2241_vm1, %v2244_v7, %v2247_v5  ;;  %v2264_v30 = vand.u32 31, %v2262_v28  ;;  %v2258_v24 = vor.u32 8388608, %v2257_v9  ;;  %v4615_v12 = vshrl.u32 %v2262_v28, 5 }
 0x2d5   :  { %v2249_v39 = vsel %vm2238_vm5, nan, %v2248_v23  ;;  %v2125_v25 = vmul.f32 %v2124_v26, %v2122_v41  ;;  %v2417_v22 = vshll.u32 %v4608_v15, 30  ;;  %v2566_v0 = vshrl.u32 %v2565_v13, 23 }
 0x2d6   :  { %2883 = vst [vmem:[#allocation7 + $0x48] sm:$0xff] %v2249_v39  ;;  %v2265_v38 = vsub.s32 32, %v2264_v30  ;;  %v2267_v43 = vshll.u32 %v3438_v52, %v2264_v30  ;;  %v2270_v44 = vshll.u32 %v3439_v56, %v2264_v30  ;;  %v2273_v32 = vshll.u32 %v4982_v20, %v2264_v30 }
 0x2d7   :  { %v2126_v4 = vxor.u32 2147483648, %v2125_v25  ;;  %v4613_v16 = vsub.s32 %v2414_v19, %v2417_v22  ;;  %v2276_v50 = vshll.u32 %v4983_v17, %v2264_v30  ;;  %v2279_v31 = vshll.u32 %v3442_v8, %v2264_v30 }
 0x2d8   :  { %v2268_v63 = vshrl.u32 %v3439_v56, %v2265_v38  ;;  %v2271_v18 = vshrl.u32 %v4982_v20, %v2265_v38  ;;  %v2274_v36 = vshrl.u32 %v4983_v17, %v2265_v38  ;;  %v2277_v48 = vshrl.u32 %v3442_v8, %v2265_v38 }
 0x2d9   :  { %v2127_v62 = vsel %vm2044_vm9, %v2126_v4, %v2125_v25  ;;  %v2420_v49 = vsub.s32 0, %v4613_v16  ;;  %v2280_v21 = vshrl.u32 %v4984_v61, %v2265_v38  ;;  %v4634_v58 = vand.u32 3, %v2135_v40 }
 0x2da   :  { %v2130_v11 = vsel %vm4571_vm14, %v4418_v55, %v2127_v62  ;;  %v2269_v51 = vor.u32 %v2268_v63, %v2267_v43  ;;  %v2272_v2 = vor.u32 %v2271_v18, %v2270_v44  ;;  %v2275_v59 = vor.u32 %v2274_v36, %v2273_v32 }
 0x2db   :  { %3342 = vcosq.f32 %v2130_v11  ;;  %v2953_v35 = vmin.u32 %v2420_v49, %v4613_v16  ;;  %v2278_v19 = vor.u32 %v2277_v48, %v2276_v50  ;;  %vm2356_vm6 = vcmp.lt.s32.totalorder %v4454_v27, 0 }
 0x2dc   :  { %3344 = vsinq.f32 %v2130_v11  ;;  %v2410_v42 = vadd.s32 %v4578_v10, %v4586_v34  ;;  %v2298_v47 = vshll.u32 %v2258_v24, 8  ;;  %v2266_v14 = vshrl.u32 %v3438_v52, %v2265_v38 }
 0x2dd   :  { %v2422_v33 = vclz %v2953_v35  ;;  %v2281_v3 = vor.u32 %v2280_v21, %v2279_v31  ;;  %vm2282_vm7 = vcmp.lt.s32.totalorder %v4615_v12, 1  ;;  %v2960_v9 = vadd.s32 4294967169, %v2566_v0 }
 0x2de   :  { %vm2284_vm8 = vcmp.lt.s32.totalorder %v4615_v12, 3  ;;  %vm2285_vm9 = vcmp.lt.s32.totalorder %v4615_v12, 4  ;;  %v2290_v26 = vsel %vm2282_vm7, %v2269_v51, %v2272_v2  ;;  %vm4647_vm10 = vcmp.le.f32.partialorder %v2354_v60, 0.7853982 }
 0x2df   :  { %v2954_v5 = vadd.s32 4294967294, %v2422_v33  ;;  %v2287_v34 = vsel %vm2285_vm9, %v2275_v59, 2102212464  ;;  %v2291_v13 = vsel %vm2285_vm9, %v2278_v19, 920167782  ;;  %v2294_v7 = vsel %vm2282_vm7, %v2272_v2, %v2275_v59 }
 0x2e0   :  { %v2295_v41 = vsel %vm2285_vm9, %v2281_v3, 1326507024  ;;  %vm2283_vm12 = vcmp.lt.s32.totalorder %v4615_v12, 2  ;;  %v2292_v28 = vsel %vm2284_vm8, %v2275_v59, %v2291_v13  ;;  %v2440_v60 = vsub.s32 4, %v4608_v15 }
 0x2e1   :  { %vm2955_vm11 = vcmp.lt.s32.totalorder %v2954_v5, 0  ;;  %v2296_v23 = vsel %vm2284_vm8, %v2278_v19, %v2295_v41  ;;  %v2293_v39 = vsel %vm2283_vm12, %v2290_v26, %v2292_v28  ;;  %v2286_v24 = vsel %vm2282_vm7, %v2266_v14, %v2269_v51 }
 0x2e2   :  { %v2425_v30 = vsel %vm2955_vm11, 0, %v2954_v5  ;;  %v2297_v25 = vsel %vm2283_vm12, %v2294_v7, %v2296_v23  ;;  %v2288_v38 = vsel %vm2284_vm8, %v2272_v2, %v2287_v34  ;;  %vm2134_vm13 = vweird.f32 %v4418_v55 }
 0x2e3   :  { %v2426_v22 = vsub.s32 32, %v2425_v30  ;;  %v2430_v40 = vsub.s32 4294967266, %v2425_v30  ;;  %v4667_v4 = vmul.u32.u64.low %v2298_v47, %v2297_v25  ;;  %v4668_v0 = vmul.u32.u64.high %v2298_v47, %v2297_v25, %v4667_v4 }
 0x2e4   :  { %v4670_v43 = vmul.u32.u64.low %v2298_v47, %v2293_v39  ;;  %v4671_v63 = vmul.u32.u64.high %v2298_v47, %v2293_v39, %v4670_v43  ;;  %v2427_v44 = vshll.u32 %v4613_v16, %v2425_v30  ;;  %v2572_v49 = vadd.s32 1, %v2960_v9 }
 0x2e5   :  { %v2428_v18 = vshrl.u32 %v2410_v42, %v2426_v22  ;;  %v2431_v62 = vadd.s32 127, %v2430_v40  ;;  %vm2137_vm14 = vcmp.lt.s32.totalorder %v4634_v58, 2  ;;  %v2441_v32 = vsel %vm2356_vm6, %v2440_v60, %v4608_v15  ;;  %v1026_v42 = vpop.f32.mrf.mxu0 }
 0x2e6   :  { %v2289_v36 = vsel %vm2283_vm12, %v2286_v24, %v2288_v38  ;;  %v857_v11 = vadd.f32 %v3737_v57, %v3749_v6  ;;  %vm2138_vm15 = vcmp.eq.s32.totalorder %v4634_v58, 0  ;;  %vm2573_vm0 = vcmp.gt.s32.totalorder %v2572_v49, 0 }
 0x2e7   :  { %v2429_v51 = vor.u32 %v2428_v18, %v2427_v44  ;;  %v2432_v50 = vshll.u32 %v2431_v62, 23  ;;  %vm2307_vm1 = vc.u32 %v4668_v0, %v4670_v43  ;;  %v2308_v48 = vadd.s32 1, %v4671_v63 }
 0x2e8   :  { %v3343_v16 = vpop.eup %3342  ;;  %v2562_v35 = vand.u32 2147483647, %v4600_v1  ;;  %v2574_v15 = vsel %vm2573_vm0, %v2572_v49, 0  ;;  %v2443_v57 = vsel %vm4647_vm10, 0, %v2441_v32  ;;  %v2305_v6 = vmul.u32 %v2298_v47, %v2289_v36 }
 0x2e9   :  { %v3345_v2 = vpop.eup %3344  ;;  %v2142_v12 = vxor.u32 2147483648, %v3343_v16  ;;  %v2433_v59 = vor.u32 4788187, %v2432_v50  ;;  %vm2141_vm2 = vcmp.eq.s32.totalorder %v4634_v58, 2  ;;  %v2309_v31 = vsel %vm2307_vm1, %v2308_v48, %v4671_v63 }
 0x2ea   :  { %v2139_v19 = vxor.u32 2147483648, %v3345_v2  ;;  %v2576_v21 = vand.u32 31, %v2574_v15  ;;  %v2436_v3 = vcvt.s32.f32 %v2429_v51  ;;  %v2310_v9 = vadd.s32 %v2309_v31, %v2305_v6 }
 0x2eb   :  { %v2143_v33 = vsel %vm2141_vm2, %v2142_v12, %v3345_v2  ;;  %v2434_v14 = vand.u32 2147483647, %v2433_v59  ;;  %v2447_v26 = vadd.s32 3, %v2443_v57  ;;  %v2569_v34 = vand.u32 8388607, %v2562_v35 }
 0x2ec   :  { %v2140_v5 = vsel %vm2138_vm15, %v3343_v16, %v2139_v19  ;;  %v2577_v13 = vsub.s32 32, %v2576_v21  ;;  %v2311_v41 = vadd.s32 536870912, %v2310_v9  ;;  %v1027_v28 = vadd.f32 %v1026_v42, %v857_v11  ;;  %v1188_v16 = vpop.f32.mrf.mxu1 }
 0x2ed   :  { %v2144_v47 = vsel %vm2137_vm14, %v2140_v5, %v2143_v33  ;;  %v2437_v7 = vmul.f32 %v2436_v3, %v2434_v14  ;;  %v2579_v30 = vshll.u32 %v3438_v52, %v2576_v21  ;;  %v2582_v40 = vshll.u32 %v3439_v56, %v2576_v21 }
 0x2ee   :  { %v2145_v23 = vsel %vm2134_vm13, nan, %v2144_v47  ;;  %v2580_v60 = vshrl.u32 %v3439_v56, %v2577_v13  ;;  %v2583_v39 = vshrl.u32 %v4982_v20, %v2577_v13  ;;  %v2312_v22 = vshrl.u32 %v2311_v41, 30 }
 0x2ef   :  { %2882 = vst [vmem:[#allocation7 + $0x40] sm:$0xff] %v2145_v23  ;;  %v2438_v25 = vxor.u32 2147483648, %v2437_v7  ;;  %v2586_v58 = vshrl.u32 %v4983_v17, %v2577_v13  ;;  %v2575_v24 = vshrl.u32 %v2574_v15, 5  ;;  %v2585_v38 = vshll.u32 %v4982_v20, %v2576_v21 }
 0x2f0   :  { %v2588_v4 = vshll.u32 %v4983_v17, %v2576_v21  ;;  %v2589_v55 = vshrl.u32 %v3442_v8, %v2577_v13  ;;  %v2313_v44 = vshll.u32 %v2312_v22, 30  ;;  %v2581_v18 = vor.u32 %v2580_v60, %v2579_v30 }
 0x2f1   :  { %v2439_v63 = vsel %vm2356_vm6, %v2438_v25, %v2437_v7  ;;  %v2584_v62 = vor.u32 %v2583_v39, %v2582_v40  ;;  %v2591_v36 = vshll.u32 %v3442_v8, %v2576_v21  ;;  %v2592_v11 = vshrl.u32 %v4984_v61, %v2577_v13 }
 0x2f2   :  { %v2442_v49 = vsel %vm4647_vm10, %v4454_v27, %v2439_v63  ;;  %v2590_v32 = vor.u32 %v2589_v55, %v2588_v4  ;;  %v4716_v51 = vsub.s32 %v2310_v9, %v2313_v44  ;;  %v2587_v50 = vor.u32 %v2586_v58, %v2585_v38 }
 0x2f3   :  { %3346 = vcosq.f32 %v2442_v49  ;;  %v4718_v48 = vand.u32 3, %v2447_v26  ;;  %v2570_v15 = vor.u32 8388608, %v2569_v34  ;;  %v2593_v2 = vor.u32 %v2592_v11, %v2591_v36 }
 0x2f4   :  { %3348 = vsinq.f32 %v2442_v49  ;;  %v2316_v12 = vsub.s32 0, %v4716_v51  ;;  %vm2594_vm3 = vcmp.lt.s32.totalorder %v2575_v24, 1  ;;  %vm2597_vm4 = vcmp.lt.s32.totalorder %v2575_v24, 4 }
 0x2f5   :  { %v4721_v10 = vadd.f32 %v1188_v16, %v1027_v28  ;;  %v2578_v59 = vshrl.u32 %v3438_v52, %v2577_v13  ;;  %vm2596_vm5 = vcmp.lt.s32.totalorder %v2575_v24, 3  ;;  %v2602_v57 = vsel %vm2594_vm3, %v2581_v18, %v2584_v62 }
 0x2f6   :  { %v2603_v6 = vsel %vm2597_vm4, %v2590_v32, 920167782  ;;  %v2949_v19 = vmin.u32 %v2316_v12, %v4716_v51  ;;  %vm2595_vm6 = vcmp.lt.s32.totalorder %v2575_v24, 2  ;;  %v2599_v31 = vsel %vm2597_vm4, %v2587_v50, 2102212464  ;;  %v3203_v12 = vpop.f32.mrf.mxu0 }
 0x2f7   :  { %v2604_v21 = vsel %vm2596_vm5, %v2587_v50, %v2603_v6  ;;  %v2606_v33 = vsel %vm2594_vm3, %v2584_v62, %v2587_v50  ;;  %v2607_v14 = vsel %vm2597_vm4, %v2593_v2, 1326507024  ;;  %v2610_v3 = vshll.u32 %v2570_v15, 8 }
 0x2f8   :  { %v2605_v42 = vsel %vm2595_vm6, %v2602_v57, %v2604_v21  ;;  %vm4731_vm7 = vcmp.le.f32.partialorder %v2250_v46, 0.7853982  ;;  %v2318_v5 = vclz %v2949_v19  ;;  %v2336_v26 = vsub.s32 4, %v2312_v22 }
 0x2f9   :  { %v2598_v34 = vsel %vm2594_vm3, %v2578_v59, %v2581_v18  ;;  %v2600_v13 = vsel %vm2596_vm5, %v2584_v62, %v2599_v31  ;;  %v2608_v47 = vsel %vm2596_vm5, %v2590_v32, %v2607_v14  ;;  %vm2252_vm8 = vcmp.lt.s32.totalorder %v4565_v29, 0 }
 0x2fa   :  { %v4738_v7 = vmul.u32.u64.low %v2610_v3, %v2605_v42  ;;  %v4739_v41 = vmul.u32.u64.high %v2610_v3, %v2605_v42, %v4738_v7  ;;  %v2950_v28 = vadd.s32 4294967294, %v2318_v5  ;;  %v2609_v23 = vsel %vm2595_vm6, %v2606_v33, %v2608_v47 }
 0x2fb   :  { %v2461_v46 = vand.u32 2139095040, %v4721_v10  ;;  %vm2449_vm9 = vcmp.lt.s32.totalorder %v4718_v48, 2  ;;  %vm2450_vm10 = vcmp.eq.s32.totalorder %v4718_v48, 0  ;;  %vm2446_vm11 = vweird.f32 %v4454_v27 }
 0x2fc   :  { %v4746_v30 = vmul.u32.u64.low %v2610_v3, %v2609_v23  ;;  %v4747_v60 = vmul.u32.u64.high %v2610_v3, %v2609_v23, %v4746_v30  ;;  %vm2951_vm12 = vcmp.lt.s32.totalorder %v2950_v28, 0  ;;  %v2337_v39 = vsel %vm2252_vm8, %v2336_v26, %v2312_v22 }
 0x2fd   :  { %v2601_v25 = vsel %vm2595_vm6, %v2598_v34, %v2600_v13  ;;  %v2462_v40 = vshrl.u32 %v2461_v46, 23  ;;  %vm2453_vm13 = vcmp.eq.s32.totalorder %v4718_v48, 2  ;;  %v2321_v58 = vsel %vm2951_vm12, 0, %v2950_v28  ;;  %v3229_v28 = vpop.f32.mrf.mxu1 }
 0x2fe   :  { %v2620_v38 = vadd.s32 1, %v4739_v41  ;;  %v2458_v4 = vand.u32 2147483647, %v4721_v10  ;;  %v2306_v55 = vadd.s32 %v4670_v43, %v4668_v0  ;;  %v2322_v63 = vsub.s32 32, %v2321_v58 }
 0x2ff   :  { %v2326_v44 = vsub.s32 4294967266, %v2321_v58  ;;  %v2956_v18 = vadd.s32 4294967169, %v2462_v40  ;;  %v2323_v49 = vshll.u32 %v4716_v51, %v2321_v58  ;;  %v2339_v22 = vsel %vm4731_vm7, 0, %v2337_v39 }
 0x300   :  { %v3347_v62 = vpop.eup %3346  ;;  %v2617_v24 = vmul.u32 %v2610_v3, %v2601_v25  ;;  %vm2619_vm14 = vc.u32 %v4747_v60, %v4738_v7  ;;  %v2324_v11 = vshrl.u32 %v2306_v55, %v2322_v63  ;;  %v2465_v43 = vand.u32 8388607, %v2458_v4 }
 0x301   :  { %v3349_v32 = vpop.eup %3348  ;;  %v2454_v36 = vxor.u32 2147483648, %v3347_v62  ;;  %v2327_v50 = vadd.s32 127, %v2326_v44  ;;  %v2621_v16 = vsel %vm2619_vm14, %v2620_v38, %v4739_v41  ;;  %v2468_v2 = vadd.s32 1, %v2956_v18 }
 0x302   :  { %v2451_v15 = vxor.u32 2147483648, %v3349_v32  ;;  %v2622_v0 = vadd.s32 %v2621_v16, %v2617_v24  ;;  %v2325_v59 = vor.u32 %v2324_v11, %v2323_v49  ;;  %v881_v6 = vadd.f32 %v3743_v54, %v3754_v45 }
 0x303   :  { %v2455_v51 = vsel %vm2453_vm13, %v2454_v36, %v3349_v32  ;;  %v2328_v57 = vshll.u32 %v2327_v50, 23  ;;  %v2343_v31 = vadd.s32 3, %v2339_v22  ;;  %vm2469_vm15 = vcmp.gt.s32.totalorder %v2468_v2, 0 }
 0x304   :  { %v2452_v19 = vsel %vm2450_vm10, %v3347_v62, %v2451_v15  ;;  %v2623_v21 = vadd.s32 536870912, %v2622_v0  ;;  %v2470_v14 = vsel %vm2469_vm15, %v2468_v2, 0  ;;  %v1045_v3 = vadd.f32 %v3203_v12, %v881_v6 }
 0x305   :  { %v2456_v42 = vsel %vm2449_vm9, %v2452_v19, %v2455_v51  ;;  %v2329_v33 = vor.u32 4788187, %v2328_v57  ;;  %v2466_v34 = vor.u32 8388608, %v2465_v43  ;;  %v2472_v13 = vand.u32 31, %v2470_v14 }
 0x306   :  { %v2457_v5 = vsel %vm2446_vm11, nan, %v2456_v42  ;;  %v4775_v26 = vshrl.u32 %v2623_v21, 30  ;;  %v2332_v45 = vcvt.s32.f32 %v2325_v59  ;;  %v4778_v48 = vand.u32 3, %v2343_v31 }
 0x307   :  { %2885 = vst [vmem:[#allocation7 + $0x58] sm:$0xff] %v2457_v5  ;;  %v2330_v54 = vand.u32 2147483647, %v2329_v33  ;;  %v2473_v41 = vsub.s32 32, %v2472_v13  ;;  %v2618_v46 = vadd.s32 %v4738_v7, %v4747_v60  ;;  %v4784_v39 = vshll.u32 %v2466_v34, 8 }
 0x308   :  { %v2625_v47 = vshll.u32 %v4775_v26, 30  ;;  %v4786_v25 = vadd.f32 %v3229_v28, %v1045_v3  ;;  %v2475_v58 = vshll.u32 %v3438_v52, %v2472_v13  ;;  %v2478_v44 = vshll.u32 %v3439_v56, %v2472_v13 }
 0x309   :  { %v2333_v23 = vmul.f32 %v2332_v45, %v2330_v54  ;;  %v2476_v27 = vshrl.u32 %v3439_v56, %v2473_v41  ;;  %v2479_v38 = vshrl.u32 %v4982_v20, %v2473_v41  ;;  %v2482_v55 = vshrl.u32 %v4983_v17, %v2473_v41 }
 0x30a   :  { %v4781_v30 = vsub.s32 %v2622_v0, %v2625_v47  ;;  %v2481_v7 = vshll.u32 %v4982_v20, %v2472_v13  ;;  %v2485_v60 = vshrl.u32 %v3442_v8, %v2473_v41  ;;  %v2471_v62 = vshrl.u32 %v2470_v14, 5 }
 0x30b   :  { %v2334_v40 = vxor.u32 2147483648, %v2333_v23  ;;  %v2477_v49 = vor.u32 %v2476_v27, %v2475_v58  ;;  %v2484_v22 = vshll.u32 %v4983_v17, %v2472_v13  ;;  %v2480_v36 = vor.u32 %v2479_v38, %v2478_v44 }
 0x30c   :  { %v2628_v63 = vsub.s32 0, %v4781_v30  ;;  %v2483_v11 = vor.u32 %v2482_v55, %v2481_v7  ;;  %v2487_v16 = vshll.u32 %v3442_v8, %v2472_v13  ;;  %v2488_v15 = vshrl.u32 %v4984_v61, %v2473_v41 }
 0x30d   :  { %v2335_v18 = vsel %vm2252_vm8, %v2334_v40, %v2333_v23  ;;  %v2486_v50 = vor.u32 %v2485_v60, %v2484_v22  ;;  %v2770_v43 = vand.u32 2147483647, %v4786_v25  ;;  %v2773_v2 = vand.u32 2139095040, %v4786_v25 }
 0x30e   :  { %v2338_v24 = vsel %vm4731_vm7, %v4565_v29, %v2335_v18  ;;  %v2961_v32 = vmin.u32 %v2628_v63, %v4781_v30  ;;  %v2648_v12 = vsub.s32 4, %v4775_v26  ;;  %v2474_v9 = vshrl.u32 %v3438_v52, %v2473_v41  ;;  %v1038_v63 = vpop.f32.mrf.mxu0 }
 0x30f   :  { %3350 = vcosq.f32 %v2338_v24  ;;  %v2489_v51 = vor.u32 %v2488_v15, %v2487_v16  ;;  %vm2490_vm0 = vcmp.lt.s32.totalorder %v2471_v62, 1  ;;  %vm2492_vm1 = vcmp.lt.s32.totalorder %v2471_v62, 3 }
 0x310   :  { %3352 = vsinq.f32 %v2338_v24  ;;  %v2630_v0 = vclz %v2961_v32  ;;  %vm2493_vm2 = vcmp.lt.s32.totalorder %v2471_v62, 4  ;;  %v2498_v57 = vsel %vm2490_vm0, %v2477_v49, %v2480_v36 }
 0x311   :  { %v2495_v6 = vsel %vm2493_vm2, %v2483_v11, 2102212464  ;;  %v2499_v19 = vsel %vm2493_vm2, %v2486_v50, 920167782  ;;  %v2502_v31 = vsel %vm2490_vm0, %v2480_v36, %v2483_v11  ;;  %v2503_v21 = vsel %vm2493_vm2, %v2489_v51, 1326507024 }
 0x312   :  { %v2962_v59 = vadd.s32 4294967294, %v2630_v0  ;;  %vm2491_vm4 = vcmp.lt.s32.totalorder %v2471_v62, 2  ;;  %v2500_v42 = vsel %vm2492_vm1, %v2483_v11, %v2499_v19  ;;  %v2504_v33 = vsel %vm2492_vm1, %v2486_v50, %v2503_v21 }
 0x313   :  { %v2494_v3 = vsel %vm2490_vm0, %v2474_v9, %v2477_v49  ;;  %v2501_v5 = vsel %vm2491_vm4, %v2498_v57, %v2500_v42  ;;  %v2505_v34 = vsel %vm2491_vm4, %v2502_v31, %v2504_v33  ;;  %v2496_v45 = vsel %vm2492_vm1, %v2480_v36, %v2495_v6  ;;  %v1200_v6 = vpop.f32.mrf.mxu1 }
 0x314   :  { %vm2963_vm3 = vcmp.lt.s32.totalorder %v2962_v59, 0  ;;  %v2774_v47 = vshrl.u32 %v2773_v2, 23  ;;  %v4814_v41 = vmul.u32.u64.low %v4784_v39, %v2505_v34  ;;  %v4815_v28 = vmul.u32.u64.high %v4784_v39, %v2505_v34, %v4814_v41 }
 0x315   :  { %v2633_v14 = vsel %vm2963_vm3, 0, %v2962_v59  ;;  %v4818_v23 = vmul.u32.u64.low %v4784_v39, %v2501_v5  ;;  %v4819_v27 = vmul.u32.u64.high %v4784_v39, %v2501_v5, %v4818_v23  ;;  %vm4825_vm5 = vcmp.le.f32.partialorder %v2562_v35, 0.7853982 }
 0x316   :  { %v2634_v13 = vsub.s32 32, %v2633_v14  ;;  %v2638_v54 = vsub.s32 4294967266, %v2633_v14  ;;  %v2635_v40 = vshll.u32 %v4781_v30, %v2633_v14  ;;  %v2968_v55 = vadd.s32 4294967169, %v2774_v47 }
 0x317   :  { %vm2564_vm6 = vcmp.lt.s32.totalorder %v4600_v1, 0  ;;  %v2497_v7 = vsel %vm2491_vm4, %v2494_v3, %v2496_v45  ;;  %v873_v60 = vadd.f32 %v3751_v37, %v3756_v53  ;;  %vm2349_vm7 = vcmp.eq.s32.totalorder %v4778_v48, 2 }
 0x318   :  { %v2636_v58 = vshrl.u32 %v2618_v46, %v2634_v13  ;;  %v2639_v38 = vadd.s32 127, %v2638_v54  ;;  %v2649_v46 = vsel %vm2564_vm6, %v2648_v12, %v4775_v26  ;;  %v2780_v30 = vadd.s32 1, %v2968_v55 }
 0x319   :  { %vm2515_vm8 = vc.u32 %v4815_v28, %v4818_v23  ;;  %v2516_v35 = vadd.s32 1, %v4819_v27  ;;  %v1039_v22 = vadd.f32 %v1038_v63, %v873_v60  ;;  %v2513_v32 = vmul.u32 %v4784_v39, %v2497_v7 }
 0x31a   :  { %v2637_v18 = vor.u32 %v2636_v58, %v2635_v40  ;;  %v2640_v49 = vshll.u32 %v2639_v38, 23  ;;  %v2777_v37 = vand.u32 8388607, %v2770_v43  ;;  %vm2781_vm9 = vcmp.gt.s32.totalorder %v2780_v30, 0 }
 0x31b   :  { %v2651_v26 = vsel %vm4825_vm5, 0, %v2649_v46  ;;  %v2517_v11 = vsel %vm2515_vm8, %v2516_v35, %v4819_v27  ;;  %v2782_v50 = vsel %vm2781_vm9, %v2780_v30, 0  ;;  %vm2342_vm10 = vweird.f32 %v4565_v29 }
 0x31c   :  { %v3351_v62 = vpop.eup %3350  ;;  %v2641_v24 = vor.u32 4788187, %v2640_v49  ;;  %v2644_v0 = vcvt.s32.f32 %v2637_v18  ;;  %v2518_v2 = vadd.s32 %v2517_v11, %v2513_v32  ;;  %vm2346_vm11 = vcmp.eq.s32.totalorder %v4778_v48, 0 }
 0x31d   :  { %v3353_v53 = vpop.eup %3352  ;;  %v2350_v36 = vxor.u32 2147483648, %v3351_v62  ;;  %v2784_v12 = vand.u32 31, %v2782_v50  ;;  %vm2345_vm12 = vcmp.lt.s32.totalorder %v4778_v48, 2  ;;  %v2655_v19 = vadd.s32 3, %v2651_v26 }
 0x31e   :  { %v2347_v16 = vxor.u32 2147483648, %v3353_v53  ;;  %v2642_v15 = vand.u32 2147483647, %v2641_v24  ;;  %v2519_v59 = vadd.s32 536870912, %v2518_v2  ;;  %v2778_v31 = vor.u32 8388608, %v2777_v37 }
 0x31f   :  { %v2351_v39 = vsel %vm2349_vm7, %v2350_v36, %v3353_v53  ;;  %v2785_v21 = vsub.s32 32, %v2784_v12  ;;  %v4853_v29 = vadd.f32 %v1200_v6, %v1039_v22  ;;  %v2787_v3 = vshll.u32 %v3438_v52, %v2784_v12 }
 0x320   :  { %v2348_v9 = vsel %vm2346_vm11, %v3351_v62, %v2347_v16  ;;  %v2645_v51 = vmul.f32 %v2644_v0, %v2642_v15  ;;  %v4851_v14 = vshrl.u32 %v2519_v59, 30  ;;  %v2783_v45 = vshrl.u32 %v2782_v50, 5 }
 0x321   :  { %v2352_v57 = vsel %vm2345_vm12, %v2348_v9, %v2351_v39  ;;  %v2788_v5 = vshrl.u32 %v3439_v56, %v2785_v21  ;;  %v2791_v48 = vshrl.u32 %v4982_v20, %v2785_v21  ;;  %v2794_v34 = vshrl.u32 %v4983_v17, %v2785_v21 }
 0x322   :  { %v2353_v42 = vsel %vm2342_vm10, nan, %v2352_v57  ;;  %v2646_v33 = vxor.u32 2147483648, %v2645_v51  ;;  %v2521_v54 = vshll.u32 %v4851_v14, 30  ;;  %v2793_v47 = vshll.u32 %v4982_v20, %v2784_v12 }
 0x323   :  { %2884 = vst [vmem:[#allocation7 + $0x50] sm:$0xff] %v2353_v42  ;;  %v2789_v27 = vor.u32 %v2788_v5, %v2787_v3  ;;  %v2790_v40 = vshll.u32 %v3439_v56, %v2784_v12  ;;  %v2796_v58 = vshll.u32 %v4983_v17, %v2784_v12  ;;  %v2797_v63 = vshrl.u32 %v3442_v8, %v2785_v21 }
 0x324   :  { %v2647_v13 = vsel %vm2564_vm6, %v2646_v33, %v2645_v51  ;;  %v4868_v38 = vsub.s32 %v2518_v2, %v2521_v54  ;;  %v2795_v55 = vor.u32 %v2794_v34, %v2793_v47  ;;  %v2799_v60 = vshll.u32 %v3442_v8, %v2784_v12 }
 0x325   :  { %v2650_v41 = vsel %vm4825_vm5, %v4600_v1, %v2647_v13  ;;  %v2792_v7 = vor.u32 %v2791_v48, %v2790_v40  ;;  %v2800_v18 = vshrl.u32 %v4984_v61, %v2785_v21  ;;  %v4873_v49 = vand.u32 3, %v2655_v19 }
 0x326   :  { %3354 = vcosq.f32 %v2650_v41  ;;  %v2524_v44 = vsub.s32 0, %v4868_v38  ;;  %v2798_v46 = vor.u32 %v2797_v63, %v2796_v58  ;;  %vm2805_vm13 = vcmp.lt.s32.totalorder %v2783_v45, 4 }
 0x327   :  { %3356 = vsinq.f32 %v2650_v41  ;;  %v2801_v30 = vor.u32 %v2800_v18, %v2799_v60  ;;  %v2818_v35 = vshll.u32 %v2778_v31, 8  ;;  %v2669_v22 = vand.u32 2139095040, %v4853_v29 }
 0x328   :  { %v2957_v62 = vmin.u32 %v2524_v44, %v4868_v38  ;;  %v2786_v24 = vshrl.u32 %v3438_v52, %v2785_v21  ;;  %vm2802_vm14 = vcmp.lt.s32.totalorder %v2783_v45, 1  ;;  %v2807_v32 = vsel %vm2805_vm13, %v2795_v55, 2102212464 }
 0x329   :  { %v2810_v37 = vsel %vm2802_vm14, %v2789_v27, %v2792_v7  ;;  %v2811_v53 = vsel %vm2805_vm13, %v2798_v46, 920167782  ;;  %v2814_v36 = vsel %vm2802_vm14, %v2792_v7, %v2795_v55  ;;  %v2815_v26 = vsel %vm2805_vm13, %v2801_v30, 1326507024 }
 0x32a   :  { %v2526_v11 = vclz %v2957_v62  ;;  %vm2803_vm15 = vcmp.lt.s32.totalorder %v2783_v45, 2  ;;  %vm2804_vm0 = vcmp.lt.s32.totalorder %v2783_v45, 3  ;;  %v2806_v50 = vsel %vm2802_vm14, %v2786_v24, %v2789_v27 }
 0x32b   :  { %v2808_v16 = vsel %vm2804_vm0, %v2792_v7, %v2807_v32  ;;  %v2812_v15 = vsel %vm2804_vm0, %v2795_v55, %v2811_v53  ;;  %v2816_v0 = vsel %vm2804_vm0, %v2798_v46, %v2815_v26  ;;  %v2670_v2 = vshrl.u32 %v2669_v22, 23 }
 0x32c   :  { %v2958_v39 = vadd.s32 4294967294, %v2526_v11  ;;  %v2813_v12 = vsel %vm2803_vm15, %v2810_v37, %v2812_v15  ;;  %v2817_v9 = vsel %vm2803_vm15, %v2814_v36, %v2816_v0  ;;  %v2809_v19 = vsel %vm2803_vm15, %v2806_v50, %v2808_v16 }
 0x32d   :  { %v4879_v51 = vmul.u32.u64.low %v2818_v35, %v2817_v9  ;;  %v4880_v59 = vmul.u32.u64.high %v2818_v35, %v2817_v9, %v4879_v51  ;;  %v4882_v57 = vmul.u32.u64.low %v2818_v35, %v2813_v12  ;;  %v4883_v6 = vmul.u32.u64.high %v2818_v35, %v2813_v12, %v4882_v57 }
 0x32e   :  { %vm2959_vm1 = vcmp.lt.s32.totalorder %v2958_v39, 0  ;;  %v2964_v31 = vadd.s32 4294967169, %v2670_v2  ;;  %vm2658_vm2 = vcmp.eq.s32.totalorder %v4873_v49, 0  ;;  %vm2661_vm3 = vcmp.eq.s32.totalorder %v4873_v49, 2 }
 0x32f   :  { %v2529_v21 = vsel %vm2959_vm1, 0, %v2958_v39  ;;  %v2514_v42 = vadd.s32 %v4818_v23, %v4815_v28  ;;  %v2825_v13 = vmul.u32 %v2818_v35, %v2809_v19  ;;  %vm2827_vm4 = vc.u32 %v4880_v59, %v4882_v57 }
 0x330   :  { %v2530_v33 = vsub.s32 32, %v2529_v21  ;;  %v2534_v3 = vsub.s32 4294967266, %v2529_v21  ;;  %v2676_v5 = vadd.s32 1, %v2964_v31  ;;  %v2531_v34 = vshll.u32 %v4868_v38, %v2529_v21 }
 0x331   :  { %v2828_v54 = vadd.s32 1, %v4883_v6  ;;  %v2666_v23 = vand.u32 2147483647, %v4853_v29  ;;  %vm2657_vm6 = vcmp.lt.s32.totalorder %v4873_v49, 2  ;;  %vm2654_vm7 = vweird.f32 %v4600_v1 }
 0x332   :  { %v2532_v41 = vshrl.u32 %v2514_v42, %v2530_v33  ;;  %v2535_v27 = vadd.s32 127, %v2534_v3  ;;  %vm2677_vm5 = vcmp.gt.s32.totalorder %v2676_v5, 0  ;;  %vm2460_vm8 = vcmp.lt.s32.totalorder %v4721_v10, 0 }
 0x333   :  { %v3355_v48 = vpop.eup %3354  ;;  %v2829_v28 = vsel %vm2827_vm4, %v2828_v54, %v4883_v6  ;;  %v2678_v58 = vsel %vm2677_vm5, %v2676_v5, 0  ;;  %v2673_v22 = vand.u32 8388607, %v2666_v23  ;;  %v2544_v37 = vsub.s32 4, %v4851_v14 }
 0x334   :  { %v3357_v45 = vpop.eup %3356  ;;  %v2662_v47 = vxor.u32 2147483648, %v3355_v48  ;;  %v2533_v55 = vor.u32 %v2532_v41, %v2531_v34  ;;  %v2536_v63 = vshll.u32 %v2535_v27, 23  ;;  %v2830_v7 = vadd.s32 %v2829_v28, %v2825_v13 }
 0x335   :  { %v2659_v40 = vxor.u32 2147483648, %v3357_v45  ;;  %v2680_v18 = vand.u32 31, %v2678_v58  ;;  %v2674_v0 = vor.u32 8388608, %v2673_v22  ;;  %v2679_v2 = vshrl.u32 %v2678_v58, 5 }
 0x336   :  { %v2663_v38 = vsel %vm2661_vm3, %v2662_v47, %v3357_v45  ;;  %v2537_v46 = vor.u32 4788187, %v2536_v63  ;;  %v2831_v30 = vadd.s32 536870912, %v2830_v7  ;;  %v2540_v32 = vcvt.s32.f32 %v2533_v55 }
 0x337   :  { %v2660_v60 = vsel %vm2658_vm2, %v3355_v48, %v2659_v40  ;;  %v2681_v62 = vsub.s32 32, %v2680_v18  ;;  %v2683_v53 = vshll.u32 %v3438_v52, %v2680_v18  ;;  %v2689_v16 = vshll.u32 %v4982_v20, %v2680_v18 }
 0x338   :  { %v2664_v44 = vsel %vm2657_vm6, %v2660_v60, %v2663_v38  ;;  %v2538_v24 = vand.u32 2147483647, %v2537_v46  ;;  %v4906_v49 = vshrl.u32 %v2831_v30, 30  ;;  %v2686_v39 = vshll.u32 %v3439_v56, %v2680_v18 }
 0x339   :  { %v2665_v35 = vsel %vm2654_vm7, nan, %v2664_v44  ;;  %v2684_v1 = vshrl.u32 %v3439_v56, %v2681_v62  ;;  %v2687_v36 = vshrl.u32 %v4982_v20, %v2681_v62  ;;  %v2690_v26 = vshrl.u32 %v4983_v17, %v2681_v62 }
 0x33a   :  { %2887 = vst [vmem:[#allocation7 + $0x68] sm:$0xff] %v2665_v35  ;;  %v2541_v11 = vmul.f32 %v2540_v32, %v2538_v24  ;;  %v2833_v50 = vshll.u32 %v4906_v49, 30  ;;  %v2693_v15 = vshrl.u32 %v3442_v8, %v2681_v62  ;;  %v2692_v12 = vshll.u32 %v4983_v17, %v2680_v18 }
 0x33b   :  { %v2685_v6 = vor.u32 %v2684_v1, %v2683_v53  ;;  %v2691_v19 = vor.u32 %v2690_v26, %v2689_v16  ;;  %v2688_v31 = vor.u32 %v2687_v36, %v2686_v39  ;;  %v2695_v42 = vshll.u32 %v3442_v8, %v2680_v18 }
 0x33c   :  { %v2542_v9 = vxor.u32 2147483648, %v2541_v11  ;;  %v2834_v51 = vsub.s32 %v2830_v7, %v2833_v50  ;;  %v2694_v21 = vor.u32 %v2693_v15, %v2692_v12  ;;  %v2696_v33 = vshrl.u32 %v4984_v61, %v2681_v62 }
 0x33d   :  { %vm4921_vm9 = vcmp.le.f32.partialorder %v2458_v4, 0.7853982  ;;  %v2545_v17 = vsel %vm2460_vm8, %v2544_v37, %v4851_v14  ;;  %v2682_v61 = vshrl.u32 %v3438_v52, %v2681_v62  ;;  %vm2701_vm10 = vcmp.lt.s32.totalorder %v2679_v2, 4 }
 0x33e   :  { %v2543_v56 = vsel %vm2460_vm8, %v2542_v9, %v2541_v11  ;;  %v2836_v3 = vsub.s32 0, %v2834_v51  ;;  %v2697_v5 = vor.u32 %v2696_v33, %v2695_v42  ;;  %vm2698_vm11 = vcmp.lt.s32.totalorder %v2679_v2, 1 }
 0x33f   :  { %v2546_v8 = vsel %vm4921_vm9, %v4721_v10, %v2543_v56  ;;  %v2703_v48 = vsel %vm2701_vm10, %v2691_v19, 2102212464  ;;  %v2706_v34 = vsel %vm2698_vm11, %v2685_v6, %v2688_v31  ;;  %v2707_v13 = vsel %vm2701_vm10, %v2694_v21, 920167782 }
 0x340   :  { %3358 = vcosq.f32 %v2546_v8  ;;  %v2969_v4 = vmin.u32 %v2836_v3, %v2834_v51  ;;  %v2714_v54 = vshll.u32 %v2674_v0, 8  ;;  %vm2699_vm12 = vcmp.lt.s32.totalorder %v2679_v2, 2 }
 0x341   :  { %3360 = vsinq.f32 %v2546_v8  ;;  %vm2700_vm13 = vcmp.lt.s32.totalorder %v2679_v2, 3  ;;  %v2702_v45 = vsel %vm2698_vm11, %v2682_v61, %v2685_v6  ;;  %v2710_v27 = vsel %vm2698_vm11, %v2688_v31, %v2691_v19 }
 0x342   :  { %v2838_v14 = vclz %v2969_v4  ;;  %v2704_v47 = vsel %vm2700_vm13, %v2688_v31, %v2703_v48  ;;  %v2708_v41 = vsel %vm2700_vm13, %v2691_v19, %v2707_v13  ;;  %v2711_v52 = vsel %vm2701_vm10, %v2697_v5, 1326507024 }
 0x343   :  { %v2547_v40 = vsel %vm4921_vm9, 0, %v2545_v17  ;;  %v2709_v58 = vsel %vm2699_vm12, %v2706_v34, %v2708_v41  ;;  %v2712_v38 = vsel %vm2700_vm13, %v2694_v21, %v2711_v52  ;;  %v2705_v60 = vsel %vm2699_vm12, %v2702_v45, %v2704_v47 }
 0x344   :  { %v2970_v28 = vadd.s32 4294967294, %v2838_v14  ;;  %v2713_v55 = vsel %vm2699_vm12, %v2710_v27, %v2712_v38  ;;  %v4939_v63 = vmul.u32.u64.low %v2714_v54, %v2709_v58  ;;  %v4940_v7 = vmul.u32.u64.high %v2714_v54, %v2709_v58, %v4939_v63 }
 0x345   :  { %v4942_v18 = vmul.u32.u64.low %v2714_v54, %v2713_v55  ;;  %v4943_v44 = vmul.u32.u64.high %v2714_v54, %v2713_v55, %v4942_v18  ;;  %v2551_v46 = vadd.s32 3, %v2547_v40  ;;  %v2826_v35 = vadd.s32 %v4882_v57, %v4880_v59 }
 0x346   :  { %vm2971_vm14 = vcmp.lt.s32.totalorder %v2970_v28, 0  ;;  %v2721_v24 = vmul.u32 %v2714_v54, %v2705_v60  ;;  %v2724_v32 = vadd.s32 1, %v4940_v7  ;;  %vm2550_vm3 = vweird.f32 %v4721_v10 }
 0x347   :  { %v2841_v30 = vsel %vm2971_vm14, 0, %v2970_v28  ;;  %vm2723_vm15 = vc.u32 %v4943_v44, %v4939_v63  ;;  %v2552_v36 = vand.u32 3, %v2551_v46  ;;  %vm2772_vm4 = vcmp.lt.s32.totalorder %v4786_v25, 0 }
 0x348   :  { %v2842_v22 = vsub.s32 32, %v2841_v30  ;;  %v2846_v62 = vsub.s32 4294967266, %v2841_v30  ;;  %v2843_v37 = vshll.u32 %v2834_v51, %v2841_v30  ;;  %v2725_v26 = vsel %vm2723_vm15, %v2724_v32, %v4940_v7 }
 0x349   :  { %v2726_v16 = vadd.s32 %v2725_v26, %v2721_v24  ;;  %vm2554_vm0 = vcmp.eq.s32.totalorder %v2552_v36, 0  ;;  %vm2557_vm1 = vcmp.eq.s32.totalorder %v2552_v36, 2  ;;  %vm2553_vm2 = vcmp.lt.s32.totalorder %v2552_v36, 2 }
 0x34a   :  { %v2844_v53 = vshrl.u32 %v2826_v35, %v2842_v22  ;;  %v2847_v1 = vadd.s32 127, %v2846_v62  ;;  %v2856_v17 = vsub.s32 4, %v4906_v49  ;;  %vm2771_vm5 = vcmp.le.f32.partialorder %v2770_v43, 0.7853982 }
 0x34b   :  { %v2727_v57 = vadd.s32 536870912, %v2726_v16  ;;  %v2722_v14 = vadd.s32 %v4939_v63, %v4943_v44  ;;  %vm2862_vm10 = vweird.f32 %v4786_v25  ;;  %vm2668_vm11 = vcmp.lt.s32.totalorder %v4853_v29, 0 }
 0x34c   :  { %v2845_v11 = vor.u32 %v2844_v53, %v2843_v37  ;;  %v2848_v50 = vshll.u32 %v2847_v1, 23  ;;  %v2857_v5 = vsel %vm2772_vm4, %v2856_v17, %v4906_v49  ;;  %vm2667_vm12 = vcmp.le.f32.partialorder %v2666_v23, 0.7853982 }
 0x34d   :  { %v3359_v15 = vpop.eup %3358  ;;  %v2728_v6 = vshrl.u32 %v2727_v57, 30  ;;  %v2859_v48 = vsel %vm2771_vm5, 0, %v2857_v5 }
 0x34e   :  { %v3361_v0 = vpop.eup %3360  ;;  %v2558_v2 = vxor.u32 2147483648, %v3359_v15  ;;  %v2849_v59 = vor.u32 4788187, %v2848_v50  ;;  %v2852_v51 = vcvt.s32.f32 %v2845_v11  ;;  %v2863_v13 = vadd.s32 3, %v2859_v48 }
 0x34f   :  { %v2555_v39 = vxor.u32 2147483648, %v3361_v0  ;;  %v2729_v42 = vshll.u32 %v2728_v6, 30  ;;  %v2752_v62 = vsub.s32 4, %v2728_v6 }
 0x350   :  { %v2559_v12 = vsel %vm2557_vm1, %v2558_v2, %v3361_v0  ;;  %v2850_v9 = vand.u32 2147483647, %v2849_v59  ;;  %v2864_v52 = vand.u32 3, %v2863_v13 }
 0x351   :  { %v2556_v19 = vsel %vm2554_vm0, %v3359_v15, %v2555_v39  ;;  %v2730_v56 = vsub.s32 %v2726_v16, %v2729_v42  ;;  %v2753_v37 = vsel %vm2668_vm11, %v2752_v62, %v2728_v6  ;;  %vm2758_vm0 = vweird.f32 %v4853_v29 }
 0x352   :  { %v2560_v31 = vsel %vm2553_vm2, %v2556_v19, %v2559_v12  ;;  %v2853_v21 = vmul.f32 %v2852_v51, %v2850_v9  ;;  %vm2869_vm7 = vcmp.eq.s32.totalorder %v2864_v52, 2  ;;  %vm2866_vm8 = vcmp.eq.s32.totalorder %v2864_v52, 0 }
 0x353   :  { %v2561_v33 = vsel %vm2550_vm3, nan, %v2560_v31  ;;  %v2732_v8 = vsub.s32 0, %v2730_v56  ;;  %vm2865_vm9 = vcmp.lt.s32.totalorder %v2864_v52, 2  ;;  %v2755_v53 = vsel %vm2667_vm12, 0, %v2753_v37 }
 0x354   :  { %2886 = vst [vmem:[#allocation7 + $0x60] sm:$0xff] %v2561_v33  ;;  %v2854_v20 = vxor.u32 2147483648, %v2853_v21  ;;  %v2759_v1 = vadd.s32 3, %v2755_v53 }
 0x355   :  { %v2965_v10 = vmin.u32 %v2732_v8, %v2730_v56 }
 0x356   :  { %v2855_v3 = vsel %vm2772_vm4, %v2854_v20, %v2853_v21 }
 0x357   :  { %v2858_v61 = vsel %vm2771_vm5, %v4786_v25, %v2855_v3  ;;  %v2734_v4 = vclz %v2965_v10  ;;  %v2760_v25 = vand.u32 3, %v2759_v1 }
 0x358   :  { %3362 = vcosq.f32 %v2858_v61 }
 0x359   :  { %3364 = vsinq.f32 %v2858_v61  ;;  %v2966_v34 = vadd.s32 4294967294, %v2734_v4  ;;  %vm2765_vm13 = vcmp.eq.s32.totalorder %v2760_v25, 2  ;;  %vm2762_vm14 = vcmp.eq.s32.totalorder %v2760_v25, 0 }
 0x35a   :  { %vm2761_vm15 = vcmp.lt.s32.totalorder %v2760_v25, 2 }
 0x35b   :  { %vm2967_vm6 = vcmp.lt.s32.totalorder %v2966_v34, 0 }
 0x35c   :  { %v2737_v54 = vsel %vm2967_vm6, 0, %v2966_v34 }
 0x35d   :  { %v2738_v45 = vsub.s32 32, %v2737_v54  ;;  %v2742_v47 = vsub.s32 4294967266, %v2737_v54  ;;  %v2739_v43 = vshll.u32 %v2730_v56, %v2737_v54 }
 0x35f   :  { %v2740_v41 = vshrl.u32 %v2722_v14, %v2738_v45  ;;  %v2743_v27 = vadd.s32 127, %v2742_v47 }
 0x361   :  { %v2741_v40 = vor.u32 %v2740_v41, %v2739_v43  ;;  %v2744_v28 = vshll.u32 %v2743_v27, 23 }
 0x363   :  { %v2745_v55 = vor.u32 4788187, %v2744_v28  ;;  %v2748_v46 = vcvt.s32.f32 %v2741_v40 }
 0x365   :  { %v3363_v58 = vpop.eup %3362  ;;  %v2746_v18 = vand.u32 2147483647, %v2745_v55 }
 0x366   :  { %v3365_v38 = vpop.eup %3364  ;;  %v2870_v49 = vxor.u32 2147483648, %v3363_v58 }
 0x367   :  { %v2867_v7 = vxor.u32 2147483648, %v3365_v38  ;;  %v2749_v30 = vmul.f32 %v2748_v46, %v2746_v18 }
 0x368   :  { %v2871_v60 = vsel %vm2869_vm7, %v2870_v49, %v3365_v38 }
 0x369   :  { %v2868_v63 = vsel %vm2866_vm8, %v3363_v58, %v2867_v7  ;;  %v2750_v22 = vxor.u32 2147483648, %v2749_v30 }
 0x36a   :  { %v2872_v44 = vsel %vm2865_vm9, %v2868_v63, %v2871_v60 }
 0x36b   :  { %v2873_v35 = vsel %vm2862_vm10, nan, %v2872_v44  ;;  %v2751_v24 = vsel %vm2668_vm11, %v2750_v22, %v2749_v30 }
 0x36c   :  { %2889 = vst [vmem:[#allocation7 + $0x78] sm:$0xff] %v2873_v35  ;;  %v2754_v32 = vsel %vm2667_vm12, %v4853_v29, %v2751_v24 }
 0x36d   :  { %3366 = vcosq.f32 %v2754_v32 }
 0x36e   :  { %3368 = vsinq.f32 %v2754_v32 }
 0x37a   :  { %v3367_v36 = vpop.eup %3366 }
 0x37b   :  { %v3369_v26 = vpop.eup %3368  ;;  %v2766_v11 = vxor.u32 2147483648, %v3367_v36 }
 0x37c   :  { %v2763_v50 = vxor.u32 2147483648, %v3369_v26 }
 0x37d   :  { %v2767_v16 = vsel %vm2765_vm13, %v2766_v11, %v3369_v26 }
 0x37e   :  { %v2764_v23 = vsel %vm2762_vm14, %v3367_v36, %v2763_v50 }
 0x37f   :  { %v2768_v15 = vsel %vm2761_vm15, %v2764_v23, %v2767_v16 }
 0x380   :  { %v2769_v0 = vsel %vm2758_vm0, nan, %v2768_v15 }
 0x381   :  { %2888 = vst [vmem:[#allocation7 + $0x70] sm:$0xff] %v2769_v0 }
 0x382   :  { %3421 = shalt.err (!%p3418_p0)
}
 0x383   :  { %s3445_s20 = smov 128   ;;  %s3446_s21 = smov 8  }
 0x384   :  { %2901 = dma.vmem_to_hbm [thread:$0]  %s2896_s1, 2048, %s4969_s2, [#allocation4], %s3445_s20, %s3445_s20, %s3446_s21  }
 0x385   :  { %3434 = dma.done.wait [#allocation4], 2048  }
 0x386   :  { %3435 = vsyncadd [#allocation4], 4294965248 }
 0x387   :  { %2905 = vsyncpa [#allocation3], 1 }
 0x388   :  { %2906 = vsyncpa [#allocation6], 1 }
 0x389   :  { %2907 = vsyncpa [#allocation4], 1 }

</bundles_post_ra>
